<compile_context>
chip_gen: v6e
topology: v6e:2x2x1
jax: 0.10.0
libtpu: 0.0.40
codegen_flags: <defaults>
</compile_context>

<pallas_src>
import jax
import jax.numpy as jnp
from jax.experimental import pallas as pl
from jax.experimental.pallas import tpu as pltpu


# ----------------------------- helpers ---------------------------------------

def _round_up(x, m):
    return ((x + m - 1) // m) * m


def _pick_batch_tile(batch):
    """Largest batch tile that divides B, is a multiple of 8, and leaves >=2 grid steps."""
    for cand in (64, 32, 16, 8):
        if batch % cand == 0 and batch // cand >= 2:
            return cand
    return batch  # small batches: single block (block == full dim is legal)


# ----------------------------- Pallas kernels --------------------------------

def _mm_relu_kernel(x_ref, w_ref, b_ref, o_ref):
    """o = relu(x @ w + b); x,w bf16, f32 accumulation on the MXU."""
    acc = jnp.dot(x_ref[...], w_ref[...], preferred_element_type=jnp.float32)
    acc = jnp.maximum(acc + b_ref[...], 0.0)
    o_ref[...] = acc.astype(o_ref.dtype)


def _tail_kernel(p3_ref, w3_ref, b3_ref, w4_ref, b4_ref, w5_ref, b5_ref, o_ref):
    """Fused conv3 + ReLU + flatten + fc1 + ReLU + fc2 for one batch tile.

    p3_ref: (49, TB, 576)  conv3 im2col patches, spatial position leading
    w3_ref: (576, 32)      conv3 weight
    w4_ref: (49, 32, 512)  fc1 weight blocked per spatial position (p = 7*h + w)
    w5_ref: (512, A)       fc2 weight
    """
    n_pos = p3_ref.shape[0]            # 49
    tb = p3_ref.shape[1]

    def body(p, acc):
        pat = p3_ref[p]                                        # (TB, 576) bf16
        h3 = jnp.dot(pat, w3_ref[...],
                     preferred_element_type=jnp.float32)       # (TB, 32)
        h3 = jnp.maximum(h3 + b3_ref[...], 0.0)
        contrib = jnp.dot(h3.astype(jnp.bfloat16), w4_ref[p],
                          preferred_element_type=jnp.float32)  # (TB, 512)
        return acc + contrib

    h4 = jax.lax.fori_loop(0, n_pos, body, jnp.zeros((tb, 512), jnp.float32))
    h4 = jnp.maximum(h4 + b4_ref[...], 0.0)
    q = jnp.dot(h4.astype(jnp.bfloat16), w5_ref[...],
                preferred_element_type=jnp.float32) + b5_ref[...]
    o_ref[...] = q.astype(o_ref.dtype)


# ----------------------------- pallas_call wrappers ---------------------------

def conv_mm(patches, w, b, *, tile_m=512):
    """patches: (M, K) bf16, w: (K, N) bf16, b: (1, N) f32 -> (M, N) bf16.

    Tiled over M with a real grid (double-buffered DMA overlaps MXU compute);
    weight + bias stay VMEM-resident across all grid steps.
    """
    M, K = patches.shape
    N = w.shape[1]
    tm = min(tile_m, _round_up(M, 8))
    Mp = _round_up(M, tm)
    if Mp != M:
        patches = jnp.pad(patches, ((0, Mp - M), (0, 0)))

    out = pl.pallas_call(
        _mm_relu_kernel,
        out_shape=jax.ShapeDtypeStruct((Mp, N), jnp.bfloat16),
        grid=(Mp // tm,),
        in_specs=[
            pl.BlockSpec((tm, K), lambda i: (i, 0)),
            pl.BlockSpec((K, N), lambda i: (0, 0)),
            pl.BlockSpec((1, N), lambda i: (0, 0)),
        ],
        out_specs=pl.BlockSpec((tm, N), lambda i: (i, 0)),
        compiler_params=pltpu.CompilerParams(
            dimension_semantics=("parallel",),
            vmem_limit_bytes=32 * 1024 * 1024),
    )(patches, w, b)
    return out[:M] if Mp != M else out


def tail_fused(p3, w3, b3, w4, b4, w5, b5):
    """Fused conv3+fc1+fc2. p3: (49, B, 576) bf16 -> (B, num_actions) f32."""
    n_pos, batch, k3 = p3.shape
    num_actions = w5.shape[1]
    tb = _pick_batch_tile(batch)

    return pl.pallas_call(
        _tail_kernel,
        out_shape=jax.ShapeDtypeStruct((batch, num_actions), jnp.float32),
        grid=(batch // tb,),
        in_specs=[
            pl.BlockSpec((n_pos, tb, k3), lambda i: (0, i, 0)),
            pl.BlockSpec((k3, 32), lambda i: (0, 0)),
            pl.BlockSpec((1, 32), lambda i: (0, 0)),
            pl.BlockSpec((n_pos, 32, 512), lambda i: (0, 0, 0)),
            pl.BlockSpec((1, 512), lambda i: (0, 0)),
            pl.BlockSpec((512, num_actions), lambda i: (0, 0)),
            pl.BlockSpec((1, num_actions), lambda i: (0, 0)),
        ],
        out_specs=pl.BlockSpec((tb, num_actions), lambda i: (i, 0)),
        compiler_params=pltpu.CompilerParams(
            dimension_semantics=("parallel",),
            vmem_limit_bytes=32 * 1024 * 1024),
    )(p3, w3, b3, w4, b4, w5, b5)


# --------------------------- parameter init -----------------------------------

def _orthogonal(key, rows, cols, gain):
    """Orthogonal init matching nn.init.orthogonal_ semantics."""
    big, small = max(rows, cols), min(rows, cols)
    a = jax.random.normal(key, (big, small), dtype=jnp.float32)
    q, r = jnp.linalg.qr(a)
    q = q * jnp.sign(jnp.diagonal(r))
    if rows < cols:
        q = q.T
    return gain * q[:rows, :cols]


def init_params(key, in_channels, num_actions):
    """One-time parameter prep: bf16 matmul weights in the tap/space-to-depth
    layouts the kernels expect, f32 (1, N) biases, 1/255 folded into conv1's
    weight, fc1 weight permuted to match the NHWC flatten order."""
    ks = jax.random.split(key, 5)
    g = 2.0 ** 0.5
    C = in_channels

    # torch-layout raw weights (orthogonal init, zero bias)
    w1 = _orthogonal(ks[0], 32, C * 64, g).reshape(32, C, 8, 8)     # (OC,C,KH,KW)
    w2 = _orthogonal(ks[1], 64, 32 * 16, g).reshape(64, 32, 4, 4)
    w3 = _orthogonal(ks[2], 32, 64 * 9, g).reshape(32, 64, 3, 3)
    w4 = _orthogonal(ks[3], 512, 32 * 7 * 7, g)                     # (512, 1568)
    w5 = _orthogonal(ks[4], num_actions, 512, 1.0)                  # (A, 512)

    p = {}
    # conv1 (8x8 stride 4, seen as 2x2 over 4x4 space-to-depth blocks);
    # feature order of the patches is (I, J, dh, dw, c); fold the /255 here.
    t = (w1 / 255.0).transpose(1, 2, 3, 0).reshape(C, 2, 4, 2, 4, 32)
    p["w1"] = t.transpose(1, 3, 2, 4, 0, 5).reshape(64 * C, 32).astype(jnp.bfloat16)
    p["b1"] = jnp.zeros((1, 32), jnp.float32)
    # conv2 (4x4 stride 2, seen as 2x2 over 2x2 space-to-depth blocks)
    t = w2.transpose(1, 2, 3, 0).reshape(32, 2, 2, 2, 2, 64)
    p["w2"] = t.transpose(1, 3, 2, 4, 0, 5).reshape(512, 64).astype(jnp.bfloat16)
    p["b2"] = jnp.zeros((1, 64), jnp.float32)
    # conv3 (3x3 stride 1): feature order (i, j, c)
    p["w3"] = w3.transpose(2, 3, 1, 0).reshape(576, 32).astype(jnp.bfloat16)
    p["b3"] = jnp.zeros((1, 32), jnp.float32)
    # fc1 blocked per spatial position p = 7*h + w (matches NHWC order of conv3 out)
    p["w4"] = (w4.reshape(512, 32, 7, 7).transpose(2, 3, 1, 0)
               .reshape(49, 32, 512).astype(jnp.bfloat16))
    p["b4"] = jnp.zeros((1, 512), jnp.float32)
    # fc2
    p["w5"] = w5.T.astype(jnp.bfloat16)                              # (512, A)
    p["b5"] = jnp.zeros((1, num_actions), jnp.float32)
    return p


# ------------------------------ forward ---------------------------------------

def policy_forward(params, x):
    """x: (B, C, 84, 84) raw pixels (the /255 is folded into conv1's weight)."""
    B, C = x.shape[0], x.shape[1]

    # ---- conv1: NHWC + space-to-depth(4) so the 8x8/stride-4 conv becomes a
    # 2x2/stride-1 conv -> 4 static tap slices + concat build the im2col matrix.
    xh = jnp.transpose(x, (0, 2, 3, 1)).astype(jnp.bfloat16)            # (B,84,84,C)
    xs = (xh.reshape(B, 21, 4, 21, 4, C)
            .transpose(0, 1, 3, 2, 4, 5)
            .reshape(B, 21, 21, 16 * C))
    p1 = jnp.concatenate([xs[:, i:i + 20, j:j + 20, :]
                          for i in range(2) for j in range(2)], axis=-1)
    p1 = p1.reshape(B * 400, 64 * C)
    y1 = conv_mm(p1, params["w1"], params["b1"])                         # (B*400, 32)
    a1 = y1.reshape(B, 20, 20, 32)                                       # NHWC

    # ---- conv2: space-to-depth(2) turns 4x4/stride-2 into 2x2/stride-1.
    s = (a1.reshape(B, 10, 2, 10, 2, 32)
           .transpose(0, 1, 3, 2, 4, 5)
           .reshape(B, 10, 10, 128))
    p2 = jnp.concatenate([s[:, i:i + 9, j:j + 9, :]
                          for i in range(2) for j in range(2)], axis=-1)
    p2 = p2.reshape(B * 81, 512)
    y2 = conv_mm(p2, params["w2"], params["b2"])                         # (B*81, 64)
    a2 = y2.reshape(B, 9, 9, 64)                                         # NHWC

    # ---- conv3 + flatten + fc1 + fc2 fused in one kernel.
    p3 = jnp.concatenate([a2[:, i:i + 7, j:j + 7, :]
                          for i in range(3) for j in range(3)], axis=-1)  # (B,7,7,576)
    p3 = p3.reshape(B, 49, 576).transpose(1, 0, 2)                        # (49,B,576)
    q = tail_fused(p3, params["w3"], params["b3"], params["w4"], params["b4"],
                   params["w5"], params["b5"])
    return q                                                              # (B, A) f32


if __name__ == "__main__":
    key = jax.random.PRNGKey(0)
    k_params, k_x = jax.random.split(key)

    batch, channels, num_actions = 2, 4, 6
    # spatial must be 84 to satisfy the 32*7*7 Flatten -> Linear contract
    x = jax.random.uniform(k_x, (batch, channels, 84, 84), jnp.float32,
                           minval=0.0, maxval=255.0)

    params = init_params(k_params, channels, num_actions)

    qs = jax.jit(policy_forward)(params, x)
    qs = jax.block_until_ready(qs)
    assert qs.shape == (batch, num_actions), qs.shape
    assert bool(jnp.all(jnp.isfinite(qs)))
    print("KERNEL_OK")
</pallas_src>

<mosaic_0001>
module attributes {stable_mosaic.version = 11 : i64} {
  func.func @_mm_relu_kernel(%arg0: i32, %arg1: memref<512x256xbf16, #tpu.memory_space<vmem>>, %arg2: memref<256x32xbf16, #tpu.memory_space<vmem>>, %arg3: memref<1x32xf32, #tpu.memory_space<vmem>>, %arg4: memref<512x32xbf16, #tpu.memory_space<vmem>>) attributes {dimension_semantics = [#tpu.dimension_semantics<parallel>], iteration_bounds = array<i64: 2>, scalar_prefetch = 0 : i64, scratch_operands = 0 : i64, tpu.core_type = #tpu.core_type<tc>, window_params = [{transform_indices = @transform_0, window_bounds = array<i64: 512, 256>}, {pipeline_mode = #tpu.pipeline_mode<synchronous>, transform_indices = @transform_1, window_bounds = array<i64: 256, 32>}, {pipeline_mode = #tpu.pipeline_mode<synchronous>, transform_indices = @transform_2, window_bounds = array<i64: 1, 32>}, {transform_indices = @transform_3, window_bounds = array<i64: 512, 32>}]} {
    %c0 = arith.constant 0 : index
    %c0_0 = arith.constant 0 : index
    %0 = vector.load %arg1[%c0, %c0_0] : memref<512x256xbf16, #tpu.memory_space<vmem>>, vector<512x256xbf16>
    %c0_1 = arith.constant 0 : index
    %c0_2 = arith.constant 0 : index
    %1 = vector.load %arg2[%c0_1, %c0_2] : memref<256x32xbf16, #tpu.memory_space<vmem>>, vector<256x32xbf16>
    %cst = arith.constant dense<0.000000e+00> : vector<512x32xf32>
    %2 = tpu.matmul %0, %1, %cst {dimension_numbers = #tpu.dot_dimension_numbers<[1], [0], [0], [1], [0, 0, 1, 1], [], []>} : vector<512x256xbf16>, vector<256x32xbf16>, vector<512x32xf32> -> vector<512x32xf32>
    %c0_3 = arith.constant 0 : index
    %c0_4 = arith.constant 0 : index
    %3 = vector.load %arg3[%c0_3, %c0_4] : memref<1x32xf32, #tpu.memory_space<vmem>>, vector<1x32xf32>
    %4 = vector.broadcast %3 : vector<1x32xf32> to vector<512x32xf32>
    %5 = arith.addf %2, %4 : vector<512x32xf32>
    %cst_5 = arith.constant 0.000000e+00 : f32
    %6 = vector.broadcast %cst_5 : f32 to vector<512x32xf32>
    %7 = arith.maximumf %5, %6 : vector<512x32xf32>
    %8 = arith.truncf %7 : vector<512x32xf32> to vector<512x32xbf16>
    %c0_6 = arith.constant 0 : index
    %c0_7 = arith.constant 0 : index
    %9 = vector.load %arg4[%c0_6, %c0_7] : memref<512x32xbf16, #tpu.memory_space<vmem>>, vector<512x32xbf16>
    tpu.vector_store %arg4[%c0_6, %c0_7], %8 {strides = array<i32>} : memref<512x32xbf16, #tpu.memory_space<vmem>>, vector<512x32xbf16>,
    return
  }
  func.func @transform_0(%arg0: i32) -> (i32, i32) {
    %c0_i32 = arith.constant 0 : i32
    %c0_i32_0 = arith.constant 0 : i32
    return %arg0, %c0_i32 : i32, i32
  }
  func.func @transform_1(%arg0: i32) -> (i32, i32) {
    %c0_i32 = arith.constant 0 : i32
    %c0_i32_0 = arith.constant 0 : i32
    %c0_i32_1 = arith.constant 0 : i32
    return %c0_i32, %c0_i32_0 : i32, i32
  }
  func.func @transform_2(%arg0: i32) -> (i32, i32) {
    %c0_i32 = arith.constant 0 : i32
    %c0_i32_0 = arith.constant 0 : i32
    %c0_i32_1 = arith.constant 0 : i32
    return %c0_i32, %c0_i32_0 : i32, i32
  }
  func.func @transform_3(%arg0: i32) -> (i32, i32) {
    %c0_i32 = arith.constant 0 : i32
    %c0_i32_0 = arith.constant 0 : i32
    return %arg0, %c0_i32 : i32, i32
  }
}

module attributes {stable_mosaic.version = 11 : i64} {
  func.func @_mm_relu_kernel(%arg0: i32, %arg1: memref<168x512xbf16, #tpu.memory_space<vmem>>, %arg2: memref<512x64xbf16, #tpu.memory_space<vmem>>, %arg3: memref<1x64xf32, #tpu.memory_space<vmem>>, %arg4: memref<168x64xbf16, #tpu.memory_space<vmem>>) attributes {dimension_semantics = [#tpu.dimension_semantics<parallel>], iteration_bounds = array<i64: 1>, scalar_prefetch = 0 : i64, scratch_operands = 0 : i64, tpu.core_type = #tpu.core_type<tc>, window_params = [{transform_indices = @transform_0, window_bounds = array<i64: 168, 512>}, {pipeline_mode = #tpu.pipeline_mode<synchronous>, transform_indices = @transform_1, window_bounds = array<i64: 512, 64>}, {pipeline_mode = #tpu.pipeline_mode<synchronous>, transform_indices = @transform_2, window_bounds = array<i64: 1, 64>}, {transform_indices = @transform_3, window_bounds = array<i64: 168, 64>}]} {
    %c0 = arith.constant 0 : index
    %c0_0 = arith.constant 0 : index
    %0 = vector.load %arg1[%c0, %c0_0] : memref<168x512xbf16, #tpu.memory_space<vmem>>, vector<168x512xbf16>
    %c0_1 = arith.constant 0 : index
    %c0_2 = arith.constant 0 : index
    %1 = vector.load %arg2[%c0_1, %c0_2] : memref<512x64xbf16, #tpu.memory_space<vmem>>, vector<512x64xbf16>
    %cst = arith.constant dense<0.000000e+00> : vector<168x64xf32>
    %2 = tpu.matmul %0, %1, %cst {dimension_numbers = #tpu.dot_dimension_numbers<[1], [0], [0], [1], [0, 0, 1, 1], [], []>} : vector<168x512xbf16>, vector<512x64xbf16>, vector<168x64xf32> -> vector<168x64xf32>
    %c0_3 = arith.constant 0 : index
    %c0_4 = arith.constant 0 : index
    %3 = vector.load %arg3[%c0_3, %c0_4] : memref<1x64xf32, #tpu.memory_space<vmem>>, vector<1x64xf32>
    %4 = vector.broadcast %3 : vector<1x64xf32> to vector<168x64xf32>
    %5 = arith.addf %2, %4 : vector<168x64xf32>
    %cst_5 = arith.constant 0.000000e+00 : f32
    %6 = vector.broadcast %cst_5 : f32 to vector<168x64xf32>
    %7 = arith.maximumf %5, %6 : vector<168x64xf32>
    %8 = arith.truncf %7 : vector<168x64xf32> to vector<168x64xbf16>
    %c0_6 = arith.constant 0 : index
    %c0_7 = arith.constant 0 : index
    %9 = vector.load %arg4[%c0_6, %c0_7] : memref<168x64xbf16, #tpu.memory_space<vmem>>, vector<168x64xbf16>
    tpu.vector_store %arg4[%c0_6, %c0_7], %8 {strides = array<i32>} : memref<168x64xbf16, #tpu.memory_space<vmem>>, vector<168x64xbf16>,
    return
  }
  func.func @transform_0(%arg0: i32) -> (i32, i32) {
    %c0_i32 = arith.constant 0 : i32
    %c0_i32_0 = arith.constant 0 : i32
    return %arg0, %c0_i32 : i32, i32
  }
  func.func @transform_1(%arg0: i32) -> (i32, i32) {
    %c0_i32 = arith.constant 0 : i32
    %c0_i32_0 = arith.constant 0 : i32
    %c0_i32_1 = arith.constant 0 : i32
    return %c0_i32, %c0_i32_0 : i32, i32
  }
  func.func @transform_2(%arg0: i32) -> (i32, i32) {
    %c0_i32 = arith.constant 0 : i32
    %c0_i32_0 = arith.constant 0 : i32
    %c0_i32_1 = arith.constant 0 : i32
    return %c0_i32, %c0_i32_0 : i32, i32
  }
  func.func @transform_3(%arg0: i32) -> (i32, i32) {
    %c0_i32 = arith.constant 0 : i32
    %c0_i32_0 = arith.constant 0 : i32
    return %arg0, %c0_i32 : i32, i32
  }
}

module attributes {stable_mosaic.version = 11 : i64} {
  func.func @_tail_kernel(%arg0: i32, %arg1: memref<49x2x576xbf16, #tpu.memory_space<vmem>>, %arg2: memref<576x32xbf16, #tpu.memory_space<vmem>>, %arg3: memref<1x32xf32, #tpu.memory_space<vmem>>, %arg4: memref<49x32x512xbf16, #tpu.memory_space<vmem>>, %arg5: memref<1x512xf32, #tpu.memory_space<vmem>>, %arg6: memref<512x6xbf16, #tpu.memory_space<vmem>>, %arg7: memref<1x6xf32, #tpu.memory_space<vmem>>, %arg8: memref<2x6xf32, #tpu.memory_space<vmem>>) attributes {dimension_semantics = [#tpu.dimension_semantics<parallel>], iteration_bounds = array<i64: 1>, scalar_prefetch = 0 : i64, scratch_operands = 0 : i64, tpu.core_type = #tpu.core_type<tc>, window_params = [{transform_indices = @transform_0, window_bounds = array<i64: 49, 2, 576>}, {pipeline_mode = #tpu.pipeline_mode<synchronous>, transform_indices = @transform_1, window_bounds = array<i64: 576, 32>}, {pipeline_mode = #tpu.pipeline_mode<synchronous>, transform_indices = @transform_2, window_bounds = array<i64: 1, 32>}, {pipeline_mode = #tpu.pipeline_mode<synchronous>, transform_indices = @transform_3, window_bounds = array<i64: 49, 32, 512>}, {pipeline_mode = #tpu.pipeline_mode<synchronous>, transform_indices = @transform_4, window_bounds = array<i64: 1, 512>}, {pipeline_mode = #tpu.pipeline_mode<synchronous>, transform_indices = @transform_5, window_bounds = array<i64: 512, 6>}, {pipeline_mode = #tpu.pipeline_mode<synchronous>, transform_indices = @transform_6, window_bounds = array<i64: 1, 6>}, {transform_indices = @transform_7, window_bounds = array<i64: 2, 6>}]} {
    %cst = arith.constant 0.000000e+00 : f32
    %0 = vector.broadcast %cst : f32 to vector<2x512xf32>
    %c0_i32 = arith.constant 0 : i32
    %c49_i32 = arith.constant 49 : i32
    %1 = arith.addi %c0_i32, %c49_i32 : i32
    %c1_i32 = arith.constant 1 : i32
    %2 = scf.for %arg9 = %c0_i32 to %1 step %c1_i32 iter_args(%arg10 = %0) -> (vector<2x512xf32>)  : i32 {
      %15 = arith.index_cast %arg9 : i32 to index
      %c0_10 = arith.constant 0 : index
      %c0_11 = arith.constant 0 : index
      %16 = vector.load %arg1[%15, %c0_10, %c0_11] : memref<49x2x576xbf16, #tpu.memory_space<vmem>>, vector<1x2x576xbf16>
      %17 = vector.shape_cast %16 : vector<1x2x576xbf16> to vector<2x576xbf16>
      %c0_12 = arith.constant 0 : index
      %c0_13 = arith.constant 0 : index
      %18 = vector.load %arg2[%c0_12, %c0_13] : memref<576x32xbf16, #tpu.memory_space<vmem>>, vector<576x32xbf16>
      %cst_14 = arith.constant dense<0.000000e+00> : vector<2x32xf32>
      %19 = tpu.matmul %17, %18, %cst_14 {dimension_numbers = #tpu.dot_dimension_numbers<[1], [0], [0], [1], [0, 0, 1, 1], [], []>} : vector<2x576xbf16>, vector<576x32xbf16>, vector<2x32xf32> -> vector<2x32xf32>
      %c0_15 = arith.constant 0 : index
      %c0_16 = arith.constant 0 : index
      %20 = vector.load %arg3[%c0_15, %c0_16] : memref<1x32xf32, #tpu.memory_space<vmem>>, vector<1x32xf32>
      %21 = vector.broadcast %20 : vector<1x32xf32> to vector<2x32xf32>
      %22 = arith.addf %19, %21 : vector<2x32xf32>
      %cst_17 = arith.constant 0.000000e+00 : f32
      %23 = vector.broadcast %cst_17 : f32 to vector<2x32xf32>
      %24 = arith.maximumf %22, %23 : vector<2x32xf32>
      %25 = arith.truncf %24 : vector<2x32xf32> to vector<2x32xbf16>
      %26 = arith.index_cast %arg9 : i32 to index
      %c0_18 = arith.constant 0 : index
      %c0_19 = arith.constant 0 : index
      %27 = vector.load %arg4[%26, %c0_18, %c0_19] : memref<49x32x512xbf16, #tpu.memory_space<vmem>>, vector<1x32x512xbf16>
      %28 = vector.shape_cast %27 : vector<1x32x512xbf16> to vector<32x512xbf16>
      %cst_20 = arith.constant dense<0.000000e+00> : vector<2x512xf32>
      %29 = tpu.matmul %25, %28, %cst_20 {dimension_numbers = #tpu.dot_dimension_numbers<[1], [0], [0], [1], [0, 0, 1, 1], [], []>} : vector<2x32xbf16>, vector<32x512xbf16>, vector<2x512xf32> -> vector<2x512xf32>
      %30 = arith.addf %arg10, %29 : vector<2x512xf32>
      scf.yield %30 : vector<2x512xf32>
    }
    %c49_i32_0 = arith.constant 49 : i32
    %c0 = arith.constant 0 : index
    %c0_1 = arith.constant 0 : index
    %3 = vector.load %arg5[%c0, %c0_1] : memref<1x512xf32, #tpu.memory_space<vmem>>, vector<1x512xf32>
    %4 = vector.broadcast %3 : vector<1x512xf32> to vector<2x512xf32>
    %5 = arith.addf %2, %4 : vector<2x512xf32>
    %cst_2 = arith.constant 0.000000e+00 : f32
    %6 = vector.broadcast %cst_2 : f32 to vector<2x512xf32>
    %7 = arith.maximumf %5, %6 : vector<2x512xf32>
    %8 = arith.truncf %7 : vector<2x512xf32> to vector<2x512xbf16>
    %c0_3 = arith.constant 0 : index
    %c0_4 = arith.constant 0 : index
    %9 = vector.load %arg6[%c0_3, %c0_4] : memref<512x6xbf16, #tpu.memory_space<vmem>>, vector<512x6xbf16>
    %cst_5 = arith.constant dense<0.000000e+00> : vector<2x6xf32>
    %10 = tpu.matmul %8, %9, %cst_5 {dimension_numbers = #tpu.dot_dimension_numbers<[1], [0], [0], [1], [0, 0, 1, 1], [], []>} : vector<2x512xbf16>, vector<512x6xbf16>, vector<2x6xf32> -> vector<2x6xf32>
    %c0_6 = arith.constant 0 : index
    %c0_7 = arith.constant 0 : index
    %11 = vector.load %arg7[%c0_6, %c0_7] : memref<1x6xf32, #tpu.memory_space<vmem>>, vector<1x6xf32>
    %12 = vector.broadcast %11 : vector<1x6xf32> to vector<2x6xf32>
    %13 = arith.addf %10, %12 : vector<2x6xf32>
    %c0_8 = arith.constant 0 : index
    %c0_9 = arith.constant 0 : index
    %14 = vector.load %arg8[%c0_8, %c0_9] : memref<2x6xf32, #tpu.memory_space<vmem>>, vector<2x6xf32>
    tpu.vector_store %arg8[%c0_8, %c0_9], %13 {strides = array<i32>} : memref<2x6xf32, #tpu.memory_space<vmem>>, vector<2x6xf32>,
    return
  }
  func.func @transform_0(%arg0: i32) -> (i32, i32, i32) {
    %c0_i32 = arith.constant 0 : i32
    %c0_i32_0 = arith.constant 0 : i32
    %c0_i32_1 = arith.constant 0 : i32
    return %c0_i32, %arg0, %c0_i32_0 : i32, i32, i32
  }
  func.func @transform_1(%arg0: i32) -> (i32, i32) {
    %c0_i32 = arith.constant 0 : i32
    %c0_i32_0 = arith.constant 0 : i32
    %c0_i32_1 = arith.constant 0 : i32
    return %c0_i32, %c0_i32_0 : i32, i32
  }
  func.func @transform_2(%arg0: i32) -> (i32, i32) {
    %c0_i32 = arith.constant 0 : i32
    %c0_i32_0 = arith.constant 0 : i32
    %c0_i32_1 = arith.constant 0 : i32
    return %c0_i32, %c0_i32_0 : i32, i32
  }
  func.func @transform_3(%arg0: i32) -> (i32, i32, i32) {
    %c0_i32 = arith.constant 0 : i32
    %c0_i32_0 = arith.constant 0 : i32
    %c0_i32_1 = arith.constant 0 : i32
    %c0_i32_2 = arith.constant 0 : i32
    return %c0_i32, %c0_i32_0, %c0_i32_1 : i32, i32, i32
  }
  func.func @transform_4(%arg0: i32) -> (i32, i32) {
    %c0_i32 = arith.constant 0 : i32
    %c0_i32_0 = arith.constant 0 : i32
    %c0_i32_1 = arith.constant 0 : i32
    return %c0_i32, %c0_i32_0 : i32, i32
  }
  func.func @transform_5(%arg0: i32) -> (i32, i32) {
    %c0_i32 = arith.constant 0 : i32
    %c0_i32_0 = arith.constant 0 : i32
    %c0_i32_1 = arith.constant 0 : i32
    return %c0_i32, %c0_i32_0 : i32, i32
  }
  func.func @transform_6(%arg0: i32) -> (i32, i32) {
    %c0_i32 = arith.constant 0 : i32
    %c0_i32_0 = arith.constant 0 : i32
    %c0_i32_1 = arith.constant 0 : i32
    return %c0_i32, %c0_i32_0 : i32, i32
  }
  func.func @transform_7(%arg0: i32) -> (i32, i32) {
    %c0_i32 = arith.constant 0 : i32
    %c0_i32_0 = arith.constant 0 : i32
    return %arg0, %c0_i32 : i32, i32
  }
}

</mosaic_0001>

<bundles_post_ra>
// kernel: policy_forward.3
= control target key start
LH: loop header
LB: loop body
LE: loop exit
PB: predicated region body
PF: predicated region fallthrough
CT: control target
= control target key end

     0   :  { %s1831_s12 = smov 0   ;;  %s2197_s0 = inlined_call_operand.vmem [shape: bf16[1024,256], index: 0, kind: input, shape index: {}]   ;;  %s2198_s1 = inlined_call_operand.vmem [shape: bf16[256,32], index: 1, kind: input, shape index: {}]   ;;  %s2199_s2 = inlined_call_operand.vmem [shape: f32[1,32], index: 2, kind: input, shape index: {}]   ;;  %s2200_s3 = inlined_call_operand.vmem [shape: bf16[1024,32], index: 3, kind: output, shape index: {}]  }
   0x1 LB: > { %s1427_s13 = sadd.s32 4294967295, %s1808_s12   ;;  %p1431_p0 = scmp.ge.s32.totalorder %s1808_s12, 1  ;;  %s1808_s12 = sphi %s1831_s12, %s13_s12  }
   0x2   : > { %p139_p1 = scmp.lt.s32.totalorder %s1808_s12, 3 }
   0x4   : > { %p140_p2 = pnand %p1431_p0, %p139_p1 }
   0x5   : > { %s1432_s16 = sshll.u32 (!%p140_p2), %s1427_s13, 6 }
   0x6   : > { %143 = sbr.rel (%p140_p2) target bundleno = 400 (0x190), region = 32  ;;  %p165_p3 = scmp.lt.s32.totalorder (!%p140_p2), %s1432_s16, 127 }
   0xb   : > { %v1690_v0 = vld [vmem:[%s2198_s1 + $0x38] sm:$0xff]   ;;  %v1810_v1 = vmov 0   ;;  %v1691_v2 = vld [vmem:[%s2198_s1 + $0x30] sm:$0xff]   ;;  %v1692_v3 = vld [vmem:[%s2198_s1 + $0x28] sm:$0xff]   ;;  %s2202_s16 = smov (!%p165_p3, %s1432_s16), 127  ;;  %vm1306_vm0 = vcmask 257024  }
   0xc   : > { %697 = vmatprep.subr.bf16.mxu0 %v1810_v1  ;;  %1649 = vmatprep.subr.bf16.mxu1 %v1810_v1  ;;  %v1693_v4 = vld [vmem:[%s2198_s1 + $0x20] sm:$0xff]   ;;  %s1584_s23 = sshll.u32 %s2202_s16, 3  ;;  %v1694_v5 = vld [vmem:[%s2198_s1 + $0x18] sm:$0xff]   ;;  %v1695_v7 = vld [vmem:[%s2198_s1 + $0x10] sm:$0xff]   ;;  %s1436_s29 = sshll.u32 %s2202_s16, 2 }
   0xd   : > { %698 = vmatpush1.bf16.msra.mxu0 %v1690_v0  ;;  %1665 = vmatpush1.bf16.msra.mxu1 %v1690_v0  ;;  %s1868_s28 = scalar_lea.vmem %s2197_s0, %s1584_s23  ;;  %v1696_v9 = vld [vmem:[%s2198_s1 + $0x8] sm:$0xff]   ;;  %v1697_v10 = vld [vmem:[%s2198_s1] sm:$0xff]   ;;  %v1698_v11 = vld [vmem:[%s2198_s1 + $0x78] sm:$0xff]   ;;  %s2002_s4 = scalar_lea.vmem %s2200_s3, %s1436_s29 }
   0xe   : > { %699 = vmatprep.subr.bf16.mxu0 %v1810_v1  ;;  %1650 = vmatprep.subr.bf16.mxu1 %v1810_v1  ;;  %v1708_v6 = vld [vmem:[%s1868_s28 + $0x4] ss:$8 sps:$4 sm:$0xff]   ;;  %v1699_v12 = vld [vmem:[%s2198_s1 + $0x70] sm:$0xff]   ;;  %v1702_v15 = vld [vmem:[%s2198_s1 + $0x58] sm:$0xff]  }
   0xf   : > { %v1711_v8 = vld [vmem:[%s1868_s28 + $0x104] ss:$8 sps:$4 sm:$0xff]   ;;  %729 = vmatprep.mubr.bf16.mxu0 %v1708_v6  ;;  %v1703_v16 = vld [vmem:[%s2198_s1 + $0x50] sm:$0xff]   ;;  %v1706_v19 = vld [vmem:[%s1868_s28] ss:$8 sps:$4 sm:$0xff]  }
  0x10   : > { %857 = vmatprep.mubr.bf16.mxu1 %v1711_v8  ;;  %v1700_v13 = vld [vmem:[%s2198_s1 + $0x68] sm:$0xff]   ;;  %v1701_v14 = vld [vmem:[%s2198_s1 + $0x60] sm:$0xff]   ;;  %v1712_v21 = vld [vmem:[%s1868_s28 + $0x14] ss:$8 sps:$4 sm:$0xff]  }
  0x11   : > { %700 = vmatpush1.bf16.msra.mxu0 %v1691_v2  ;;  %1666 = vmatpush1.bf16.msra.mxu1 %v1691_v2  ;;  %v1704_v17 = vld [vmem:[%s2198_s1 + $0x48] sm:$0xff]   ;;  %v1705_v18 = vld [vmem:[%s2198_s1 + $0x40] sm:$0xff]   ;;  %v1714_v22 = vld [vmem:[%s1868_s28 + $0x114] ss:$8 sps:$4 sm:$0xff]  }
  0x12   : > { %701 = vmatprep.subr.bf16.mxu0 %v1810_v1  ;;  %1651 = vmatprep.subr.bf16.mxu1 %v1810_v1  ;;  %v1709_v20 = vld [vmem:[%s1868_s28 + $0x100] ss:$8 sps:$4 sm:$0xff]   ;;  %v1716_v23 = vld [vmem:[%s1868_s28 + $0x10] ss:$8 sps:$4 sm:$0xff]   ;;  %v1718_v25 = vld [vmem:[%s1868_s28 + $0x24] ss:$8 sps:$4 sm:$0xff]  }
  0x13   : > { %v1717_v24 = vld [vmem:[%s1868_s28 + $0x110] ss:$8 sps:$4 sm:$0xff]   ;;  %v1720_v26 = vld [vmem:[%s1868_s28 + $0x124] ss:$8 sps:$4 sm:$0xff]   ;;  %v1722_v27 = vld [vmem:[%s1868_s28 + $0x20] ss:$8 sps:$4 sm:$0xff]  }
  0x14   : > { %v1723_v28 = vld [vmem:[%s1868_s28 + $0x120] ss:$8 sps:$4 sm:$0xff]   ;;  %v1724_v29 = vld [vmem:[%s1868_s28 + $0x34] ss:$8 sps:$4 sm:$0xff]   ;;  %v1728_v31 = vld [vmem:[%s1868_s28 + $0x30] ss:$8 sps:$4 sm:$0xff]  }
  0x15   : > { %702 = vmatpush1.bf16.msra.mxu0 %v1692_v3  ;;  %1667 = vmatpush1.bf16.msra.mxu1 %v1692_v3  ;;  %v1726_v30 = vld [vmem:[%s1868_s28 + $0x134] ss:$8 sps:$4 sm:$0xff]   ;;  %v1729_v32 = vld [vmem:[%s1868_s28 + $0x130] ss:$8 sps:$4 sm:$0xff]   ;;  %v1730_v33 = vld [vmem:[%s1868_s28 + $0x44] ss:$8 sps:$4 sm:$0xff]  }
  0x16   : > { %703 = vmatprep.subr.bf16.mxu0 %v1810_v1  ;;  %1652 = vmatprep.subr.bf16.mxu1 %v1810_v1  ;;  %v1732_v34 = vld [vmem:[%s1868_s28 + $0x144] ss:$8 sps:$4 sm:$0xff]   ;;  %v1734_v35 = vld [vmem:[%s1868_s28 + $0x40] ss:$8 sps:$4 sm:$0xff]   ;;  %v1736_v37 = vld [vmem:[%s1868_s28 + $0x54] ss:$8 sps:$4 sm:$0xff]  }
  0x17   : > { %v1735_v36 = vld [vmem:[%s1868_s28 + $0x140] ss:$8 sps:$4 sm:$0xff]   ;;  %v1738_v38 = vld [vmem:[%s1868_s28 + $0x154] ss:$8 sps:$4 sm:$0xff]   ;;  %v1740_v39 = vld [vmem:[%s1868_s28 + $0x50] ss:$8 sps:$4 sm:$0xff]  }
  0x18   : > { %v1741_v40 = vld [vmem:[%s1868_s28 + $0x150] ss:$8 sps:$4 sm:$0xff]   ;;  %v1742_v41 = vld [vmem:[%s1868_s28 + $0x64] ss:$8 sps:$4 sm:$0xff]   ;;  %v1746_v43 = vld [vmem:[%s1868_s28 + $0x60] ss:$8 sps:$4 sm:$0xff]  }
  0x19   : > { %704 = vmatpush1.bf16.msra.mxu0 %v1693_v4  ;;  %1668 = vmatpush1.bf16.msra.mxu1 %v1693_v4  ;;  %v1744_v42 = vld [vmem:[%s1868_s28 + $0x164] ss:$8 sps:$4 sm:$0xff]   ;;  %v1747_v44 = vld [vmem:[%s1868_s28 + $0x160] ss:$8 sps:$4 sm:$0xff]   ;;  %v1748_v45 = vld [vmem:[%s1868_s28 + $0x74] ss:$8 sps:$4 sm:$0xff]  }
  0x1a   : > { %705 = vmatprep.subr.bf16.mxu0 %v1810_v1  ;;  %1653 = vmatprep.subr.bf16.mxu1 %v1810_v1  ;;  %v1750_v46 = vld [vmem:[%s1868_s28 + $0x174] ss:$8 sps:$4 sm:$0xff]   ;;  %v1752_v47 = vld [vmem:[%s1868_s28 + $0x70] ss:$8 sps:$4 sm:$0xff]   ;;  %v1754_v49 = vld [vmem:[%s1868_s28 + $0x84] ss:$8 sps:$4 sm:$0xff]  }
  0x1b   : > { %v1753_v48 = vld [vmem:[%s1868_s28 + $0x170] ss:$8 sps:$4 sm:$0xff]   ;;  %v1756_v50 = vld [vmem:[%s1868_s28 + $0x184] ss:$8 sps:$4 sm:$0xff]   ;;  %v1758_v51 = vld [vmem:[%s1868_s28 + $0x80] ss:$8 sps:$4 sm:$0xff]  }
  0x1c   : > { %v1759_v52 = vld [vmem:[%s1868_s28 + $0x180] ss:$8 sps:$4 sm:$0xff]   ;;  %v1760_v53 = vld [vmem:[%s1868_s28 + $0x94] ss:$8 sps:$4 sm:$0xff]   ;;  %v1764_v55 = vld [vmem:[%s1868_s28 + $0x90] ss:$8 sps:$4 sm:$0xff]  }
  0x1d   : > { %706 = vmatpush1.bf16.msra.mxu0 %v1694_v5  ;;  %1669 = vmatpush1.bf16.msra.mxu1 %v1694_v5  ;;  %v1762_v54 = vld [vmem:[%s1868_s28 + $0x194] ss:$8 sps:$4 sm:$0xff]   ;;  %v1765_v56 = vld [vmem:[%s1868_s28 + $0x190] ss:$8 sps:$4 sm:$0xff]   ;;  %v1766_v57 = vld [vmem:[%s1868_s28 + $0xa4] ss:$8 sps:$4 sm:$0xff]  }
  0x1e   : > { %707 = vmatprep.subr.bf16.mxu0 %v1810_v1  ;;  %1654 = vmatprep.subr.bf16.mxu1 %v1810_v1  ;;  %v1768_v58 = vld [vmem:[%s1868_s28 + $0x1a4] ss:$8 sps:$4 sm:$0xff]   ;;  %v1770_v59 = vld [vmem:[%s1868_s28 + $0xa0] ss:$8 sps:$4 sm:$0xff]   ;;  %v1772_v61 = vld [vmem:[%s1868_s28 + $0xb4] ss:$8 sps:$4 sm:$0xff]  }
  0x1f   : > { %v1771_v60 = vld [vmem:[%s1868_s28 + $0x1a0] ss:$8 sps:$4 sm:$0xff]   ;;  %v1774_v62 = vld [vmem:[%s1868_s28 + $0x1b4] ss:$8 sps:$4 sm:$0xff]   ;;  %v1776_v63 = vld [vmem:[%s1868_s28 + $0xb0] ss:$8 sps:$4 sm:$0xff]  }
  0x20   : > { %v1777_v0 = vld [vmem:[%s1868_s28 + $0x1b0] ss:$8 sps:$4 sm:$0xff]   ;;  %v1780_v2 = vld [vmem:[%s1868_s28 + $0x1c4] ss:$8 sps:$4 sm:$0xff]   ;;  %v1782_v3 = vld [vmem:[%s1868_s28 + $0xc0] ss:$8 sps:$4 sm:$0xff]  }
  0x21   : > { %708 = vmatpush1.bf16.msra.mxu0 %v1695_v7  ;;  %1670 = vmatpush1.bf16.msra.mxu1 %v1695_v7  ;;  %v1783_v4 = vld [vmem:[%s1868_s28 + $0x1c0] ss:$8 sps:$4 sm:$0xff]   ;;  %v1784_v5 = vld [vmem:[%s1868_s28 + $0xd4] ss:$8 sps:$4 sm:$0xff]   ;;  %v1788_v7 = vld [vmem:[%s1868_s28 + $0xd0] ss:$8 sps:$4 sm:$0xff]  }
  0x22   : > { %709 = vmatprep.subr.bf16.mxu0 %v1810_v1  ;;  %1655 = vmatprep.subr.bf16.mxu1 %v1810_v1  ;;  %v1786_v6 = vld [vmem:[%s1868_s28 + $0x1d4] ss:$8 sps:$4 sm:$0xff]   ;;  %v1789_v8 = vld [vmem:[%s1868_s28 + $0x1d0] ss:$8 sps:$4 sm:$0xff]  }
  0x25   : > { %710 = vmatpush1.bf16.msra.mxu0 %v1696_v9  ;;  %1671 = vmatpush1.bf16.msra.mxu1 %v1696_v9  ;;  %v1790_v9 = vld [vmem:[%s1868_s28 + $0xe4] ss:$8 sps:$4 sm:$0xff]  }
  0x26   : > { %711 = vmatprep.subr.bf16.mxu0 %v1810_v1  ;;  %1656 = vmatprep.subr.bf16.mxu1 %v1810_v1 }
  0x29   : > { %712 = vmatpush1.bf16.msra.mxu0 %v1697_v10  ;;  %1672 = vmatpush1.bf16.msra.mxu1 %v1697_v10  ;;  %v1792_v10 = vld [vmem:[%s1868_s28 + $0x1e4] ss:$8 sps:$4 sm:$0xff]  }
  0x2a   : > { %713 = vmatprep.subr.bf16.mxu0 %v1810_v1  ;;  %1657 = vmatprep.subr.bf16.mxu1 %v1810_v1 }
  0x2d   : > { %714 = vmatpush2.bf16.msra.mxu0 %v1698_v11  ;;  %1673 = vmatpush2.bf16.msra.mxu1 %v1698_v11  ;;  %v1794_v11 = vld [vmem:[%s1868_s28 + $0xe0] ss:$8 sps:$4 sm:$0xff]  }
  0x2e   : > { %715 = vmatprep.subr.bf16.mxu0 %v1810_v1  ;;  %1658 = vmatprep.subr.bf16.mxu1 %v1810_v1 }
  0x31   : > { %716 = vmatpush2.bf16.msra.mxu0 %v1699_v12  ;;  %1674 = vmatpush2.bf16.msra.mxu1 %v1699_v12  ;;  %v1795_v12 = vld [vmem:[%s1868_s28 + $0x1e0] ss:$8 sps:$4 sm:$0xff]  }
  0x32   : > { %717 = vmatprep.subr.bf16.mxu0 %v1810_v1  ;;  %1659 = vmatprep.subr.bf16.mxu1 %v1810_v1 }
  0x35   : > { %718 = vmatpush2.bf16.msra.mxu0 %v1700_v13  ;;  %1675 = vmatpush2.bf16.msra.mxu1 %v1700_v13  ;;  %v1796_v13 = vld [vmem:[%s1868_s28 + $0xf4] ss:$8 sps:$4 sm:$0xff]  }
  0x36   : > { %719 = vmatprep.subr.bf16.mxu0 %v1810_v1  ;;  %1660 = vmatprep.subr.bf16.mxu1 %v1810_v1 }
  0x39   : > { %720 = vmatpush2.bf16.msra.mxu0 %v1701_v14  ;;  %1676 = vmatpush2.bf16.msra.mxu1 %v1701_v14  ;;  %v1798_v14 = vld [vmem:[%s1868_s28 + $0x1f4] ss:$8 sps:$4 sm:$0xff]  }
  0x3a   : > { %721 = vmatprep.subr.bf16.mxu0 %v1810_v1  ;;  %1661 = vmatprep.subr.bf16.mxu1 %v1810_v1 }
  0x3d   : > { %722 = vmatpush2.bf16.msra.mxu0 %v1702_v15  ;;  %1677 = vmatpush2.bf16.msra.mxu1 %v1702_v15  ;;  %v1800_v15 = vld [vmem:[%s1868_s28 + $0xf0] ss:$8 sps:$4 sm:$0xff]  }
  0x3e   : > { %723 = vmatprep.subr.bf16.mxu0 %v1810_v1  ;;  %1662 = vmatprep.subr.bf16.mxu1 %v1810_v1 }
  0x41   : > { %724 = vmatpush2.bf16.msra.mxu0 %v1703_v16  ;;  %1678 = vmatpush2.bf16.msra.mxu1 %v1703_v16  ;;  %v1801_v16 = vld [vmem:[%s1868_s28 + $0x1f0] ss:$8 sps:$4 sm:$0xff]  }
  0x42   : > { %725 = vmatprep.subr.bf16.mxu0 %v1810_v1  ;;  %1663 = vmatprep.subr.bf16.mxu1 %v1810_v1 }
  0x45   : > { %726 = vmatpush2.bf16.msra.mxu0 %v1704_v17  ;;  %1679 = vmatpush2.bf16.msra.mxu1 %v1704_v17  ;;  %v1994_v17 = vld [vmem:[%s2199_s2] ss:$0 sm:$0xff] }
  0x46   : > { %727 = vmatprep.subr.bf16.mxu0 %v1810_v1  ;;  %1664 = vmatprep.subr.bf16.mxu1 %v1810_v1  ;;  %v1778_v1 = vld [vmem:[%s1868_s28 + $0xc4] ss:$8 sps:$4 sm:$0xff]  }
  0x49   : > { %728 = vmatpush2.bf16.msra.mxu0 %v1705_v18  ;;  %1680 = vmatpush2.bf16.msra.mxu1 %v1705_v18 }
  0x4c   : > { %730 = vmatmul.mubr.bf16.vlgmr.msra.gmra.mxu0 %v1706_v19  ;;  %858 = vmatmul.mubr.bf16.vlgmr.msra.gmra.mxu1 %v1709_v20 }
  0x4d   : > { %737 = vmatprep.mubr.bf16.mxu0 %v1712_v21  ;;  %865 = vmatprep.mubr.bf16.mxu1 %v1714_v22 }
  0x54   : > { %738 = vmatmul.mubr.bf16.gmra.mxu0 %v1716_v23  ;;  %866 = vmatmul.mubr.bf16.gmra.mxu1 %v1717_v24 }
  0x55   : > { %745 = vmatprep.mubr.bf16.mxu0 %v1718_v25  ;;  %873 = vmatprep.mubr.bf16.mxu1 %v1720_v26 }
  0x5c   : > { %746 = vmatmul.mubr.bf16.gmra.mxu0 %v1722_v27  ;;  %874 = vmatmul.mubr.bf16.gmra.mxu1 %v1723_v28 }
  0x5d   : > { %753 = vmatprep.mubr.bf16.mxu0 %v1724_v29  ;;  %881 = vmatprep.mubr.bf16.mxu1 %v1726_v30 }
  0x64   : > { %754 = vmatmul.mubr.bf16.gmra.mxu0 %v1728_v31  ;;  %882 = vmatmul.mubr.bf16.gmra.mxu1 %v1729_v32 }
  0x65   : > { %761 = vmatprep.mubr.bf16.mxu0 %v1730_v33  ;;  %889 = vmatprep.mubr.bf16.mxu1 %v1732_v34 }
  0x6c   : > { %762 = vmatmul.mubr.bf16.gmra.mxu0 %v1734_v35  ;;  %890 = vmatmul.mubr.bf16.gmra.mxu1 %v1735_v36 }
  0x6d   : > { %769 = vmatprep.mubr.bf16.mxu0 %v1736_v37  ;;  %897 = vmatprep.mubr.bf16.mxu1 %v1738_v38 }
  0x74   : > { %770 = vmatmul.mubr.bf16.gmra.mxu0 %v1740_v39  ;;  %898 = vmatmul.mubr.bf16.gmra.mxu1 %v1741_v40 }
  0x75   : > { %777 = vmatprep.mubr.bf16.mxu0 %v1742_v41  ;;  %905 = vmatprep.mubr.bf16.mxu1 %v1744_v42 }
  0x7c   : > { %778 = vmatmul.mubr.bf16.gmra.mxu0 %v1746_v43  ;;  %906 = vmatmul.mubr.bf16.gmra.mxu1 %v1747_v44 }
  0x7d   : > { %785 = vmatprep.mubr.bf16.mxu0 %v1748_v45  ;;  %913 = vmatprep.mubr.bf16.mxu1 %v1750_v46 }
  0x84   : > { %786 = vmatmul.mubr.bf16.gmra.mxu0 %v1752_v47  ;;  %914 = vmatmul.mubr.bf16.gmra.mxu1 %v1753_v48 }
  0x85   : > { %793 = vmatprep.mubr.bf16.mxu0 %v1754_v49  ;;  %921 = vmatprep.mubr.bf16.mxu1 %v1756_v50 }
  0x8c   : > { %794 = vmatmul.mubr.bf16.gmra.mxu0 %v1758_v51  ;;  %922 = vmatmul.mubr.bf16.gmra.mxu1 %v1759_v52 }
  0x8d   : > { %801 = vmatprep.mubr.bf16.mxu0 %v1760_v53  ;;  %929 = vmatprep.mubr.bf16.mxu1 %v1762_v54 }
  0x94   : > { %802 = vmatmul.mubr.bf16.gmra.mxu0 %v1764_v55  ;;  %930 = vmatmul.mubr.bf16.gmra.mxu1 %v1765_v56 }
  0x95   : > { %809 = vmatprep.mubr.bf16.mxu0 %v1766_v57  ;;  %937 = vmatprep.mubr.bf16.mxu1 %v1768_v58 }
  0x9c   : > { %810 = vmatmul.mubr.bf16.gmra.mxu0 %v1770_v59  ;;  %938 = vmatmul.mubr.bf16.gmra.mxu1 %v1771_v60 }
  0x9d   : > { %817 = vmatprep.mubr.bf16.mxu0 %v1772_v61  ;;  %945 = vmatprep.mubr.bf16.mxu1 %v1774_v62 }
  0xa4   : > { %818 = vmatmul.mubr.bf16.gmra.mxu0 %v1776_v63  ;;  %946 = vmatmul.mubr.bf16.gmra.mxu1 %v1777_v0 }
  0xa5   : > { %825 = vmatprep.mubr.bf16.mxu0 %v1778_v1  ;;  %953 = vmatprep.mubr.bf16.mxu1 %v1780_v2 }
  0xac   : > { %826 = vmatmul.mubr.bf16.gmra.mxu0 %v1782_v3  ;;  %954 = vmatmul.mubr.bf16.gmra.mxu1 %v1783_v4 }
  0xad   : > { %833 = vmatprep.mubr.bf16.mxu0 %v1784_v5  ;;  %961 = vmatprep.mubr.bf16.mxu1 %v1786_v6 }
  0xb4   : > { %834 = vmatmul.mubr.bf16.gmra.mxu0 %v1788_v7  ;;  %962 = vmatmul.mubr.bf16.gmra.mxu1 %v1789_v8 }
  0xb5   : > { %841 = vmatprep.mubr.bf16.mxu0 %v1790_v9  ;;  %969 = vmatprep.mubr.bf16.mxu1 %v1792_v10 }
  0xbc   : > { %842 = vmatmul.mubr.bf16.gmra.mxu0 %v1794_v11  ;;  %970 = vmatmul.mubr.bf16.gmra.mxu1 %v1795_v12 }
  0xbd   : > { %849 = vmatprep.mubr.bf16.mxu0 %v1796_v13  ;;  %977 = vmatprep.mubr.bf16.mxu1 %v1798_v14 }
  0xc4   : > { %850 = vmatmul.mubr.bf16.gmra.mxu0 %v1800_v15  ;;  %978 = vmatmul.mubr.bf16.gmra.mxu1 %v1801_v16 }
 0x10c   : > { %v731_v18 = vpop.f32.mrf.mxu0  ;;  %v859_v19 = vpop.f32.mrf.mxu1 }
 0x10d   : > { %v732_v20 = vadd.f32 %v1994_v17, %v731_v18  ;;  %v860_v21 = vadd.f32 %v1994_v17, %v859_v19 }
 0x10e   : > { %v733_v22 = vpop.f32.mrf.mxu0  ;;  %v861_v23 = vpop.f32.mrf.mxu1 }
 0x10f   : > { %v986_v24 = vmax.f32 %v732_v20, 0.0  ;;  %v1018_v25 = vmax.f32 %v860_v21, 0.0 }
 0x110   : > { %v734_v26 = vpop.f32.mrf.mxu0  ;;  %v862_v27 = vpop.f32.mrf.mxu1 }
 0x111   : > { %v1585_v28 = vpack.c.bf16 %v986_v24, %v986_v24  ;;  %v1617_v29 = vpack.c.bf16 %v1018_v25, %v1018_v25  ;;  %v735_v30 = vadd.f32 %v1994_v17, %v734_v26  ;;  %v863_v31 = vadd.f32 %v1994_v17, %v862_v27 }
 0x112   : > { %v736_v32 = vpop.f32.mrf.mxu0  ;;  %v864_v33 = vpop.f32.mrf.mxu1 }
 0x113   : > { %1307 = vst.msk [vmem:[%s2002_s4] sm:$0xf] %vm1306_vm0, %v1585_v28  ;;  %1339 = vst.msk [vmem:[%s2002_s4 + $0x80] sm:$0xf] %vm1306_vm0, %v1617_v29  ;;  %v987_v34 = vmax.f32 %v735_v30, 0.0  ;;  %v1019_v35 = vmax.f32 %v863_v31, 0.0 }
 0x114   : > { %v739_v36 = vpop.f32.mrf.mxu0  ;;  %v867_v37 = vpop.f32.mrf.mxu1 }
 0x115   : > { %v1586_v38 = vpack.c.bf16 %v987_v34, %v987_v34  ;;  %v1618_v39 = vpack.c.bf16 %v1019_v35, %v1019_v35  ;;  %v740_v40 = vadd.f32 %v1994_v17, %v739_v36  ;;  %v868_v41 = vadd.f32 %v1994_v17, %v867_v37 }
 0x116   : > { %v741_v42 = vpop.f32.mrf.mxu0  ;;  %v869_v43 = vpop.f32.mrf.mxu1 }
 0x117   : > { %1308 = vst.msk [vmem:[%s2002_s4 + $0x4] sm:$0xf] %vm1306_vm0, %v1586_v38  ;;  %1340 = vst.msk [vmem:[%s2002_s4 + $0x84] sm:$0xf] %vm1306_vm0, %v1618_v39  ;;  %v988_v44 = vmax.f32 %v740_v40, 0.0  ;;  %v1020_v45 = vmax.f32 %v868_v41, 0.0 }
 0x118   : > { %v742_v46 = vpop.f32.mrf.mxu0  ;;  %v870_v47 = vpop.f32.mrf.mxu1 }
 0x119   : > { %v1587_v48 = vpack.c.bf16 %v988_v44, %v988_v44  ;;  %v1619_v49 = vpack.c.bf16 %v1020_v45, %v1020_v45  ;;  %v743_v50 = vadd.f32 %v1994_v17, %v742_v46  ;;  %v871_v51 = vadd.f32 %v1994_v17, %v870_v47 }
 0x11a   : > { %v744_v52 = vpop.f32.mrf.mxu0  ;;  %v872_v53 = vpop.f32.mrf.mxu1 }
 0x11b   : > { %1309 = vst.msk [vmem:[%s2002_s4 + $0x8] sm:$0xf] %vm1306_vm0, %v1587_v48  ;;  %1341 = vst.msk [vmem:[%s2002_s4 + $0x88] sm:$0xf] %vm1306_vm0, %v1619_v49  ;;  %v989_v54 = vmax.f32 %v743_v50, 0.0  ;;  %v1021_v55 = vmax.f32 %v871_v51, 0.0 }
 0x11c   : > { %v747_v56 = vpop.f32.mrf.mxu0  ;;  %v875_v57 = vpop.f32.mrf.mxu1 }
 0x11d   : > { %v1588_v58 = vpack.c.bf16 %v989_v54, %v989_v54  ;;  %v1620_v59 = vpack.c.bf16 %v1021_v55, %v1021_v55  ;;  %v748_v60 = vadd.f32 %v1994_v17, %v747_v56  ;;  %v876_v61 = vadd.f32 %v1994_v17, %v875_v57 }
 0x11e   : > { %v749_v62 = vpop.f32.mrf.mxu0  ;;  %v877_v63 = vpop.f32.mrf.mxu1 }
 0x11f   : > { %1310 = vst.msk [vmem:[%s2002_s4 + $0xc] sm:$0xf] %vm1306_vm0, %v1588_v58  ;;  %1342 = vst.msk [vmem:[%s2002_s4 + $0x8c] sm:$0xf] %vm1306_vm0, %v1620_v59  ;;  %v990_v0 = vmax.f32 %v748_v60, 0.0  ;;  %v1022_v1 = vmax.f32 %v876_v61, 0.0 }
 0x120   : > { %v750_v2 = vpop.f32.mrf.mxu0  ;;  %v878_v3 = vpop.f32.mrf.mxu1 }
 0x121   : > { %v1589_v4 = vpack.c.bf16 %v990_v0, %v990_v0  ;;  %v1621_v5 = vpack.c.bf16 %v1022_v1, %v1022_v1  ;;  %v751_v6 = vadd.f32 %v1994_v17, %v750_v2  ;;  %v879_v7 = vadd.f32 %v1994_v17, %v878_v3 }
 0x122   : > { %v752_v8 = vpop.f32.mrf.mxu0  ;;  %v880_v9 = vpop.f32.mrf.mxu1 }
 0x123   : > { %1311 = vst.msk [vmem:[%s2002_s4 + $0x10] sm:$0xf] %vm1306_vm0, %v1589_v4  ;;  %1343 = vst.msk [vmem:[%s2002_s4 + $0x90] sm:$0xf] %vm1306_vm0, %v1621_v5  ;;  %v991_v10 = vmax.f32 %v751_v6, 0.0  ;;  %v1023_v11 = vmax.f32 %v879_v7, 0.0 }
 0x124   : > { %v755_v12 = vpop.f32.mrf.mxu0  ;;  %v883_v13 = vpop.f32.mrf.mxu1 }
 0x125   : > { %v1590_v14 = vpack.c.bf16 %v991_v10, %v991_v10  ;;  %v1622_v15 = vpack.c.bf16 %v1023_v11, %v1023_v11  ;;  %v756_v16 = vadd.f32 %v1994_v17, %v755_v12  ;;  %v884_v18 = vadd.f32 %v1994_v17, %v883_v13 }
 0x126   : > { %v757_v19 = vpop.f32.mrf.mxu0  ;;  %v885_v20 = vpop.f32.mrf.mxu1 }
 0x127   : > { %1312 = vst.msk [vmem:[%s2002_s4 + $0x14] sm:$0xf] %vm1306_vm0, %v1590_v14  ;;  %1344 = vst.msk [vmem:[%s2002_s4 + $0x94] sm:$0xf] %vm1306_vm0, %v1622_v15  ;;  %v992_v21 = vmax.f32 %v756_v16, 0.0  ;;  %v1024_v22 = vmax.f32 %v884_v18, 0.0 }
 0x128   : > { %v758_v23 = vpop.f32.mrf.mxu0  ;;  %v886_v24 = vpop.f32.mrf.mxu1 }
 0x129   : > { %v1591_v25 = vpack.c.bf16 %v992_v21, %v992_v21  ;;  %v1623_v26 = vpack.c.bf16 %v1024_v22, %v1024_v22  ;;  %v759_v27 = vadd.f32 %v1994_v17, %v758_v23  ;;  %v887_v28 = vadd.f32 %v1994_v17, %v886_v24 }
 0x12a   : > { %v760_v29 = vpop.f32.mrf.mxu0  ;;  %v888_v30 = vpop.f32.mrf.mxu1 }
 0x12b   : > { %1313 = vst.msk [vmem:[%s2002_s4 + $0x18] sm:$0xf] %vm1306_vm0, %v1591_v25  ;;  %1345 = vst.msk [vmem:[%s2002_s4 + $0x98] sm:$0xf] %vm1306_vm0, %v1623_v26  ;;  %v993_v31 = vmax.f32 %v759_v27, 0.0  ;;  %v1025_v32 = vmax.f32 %v887_v28, 0.0 }
 0x12c   : > { %v763_v33 = vpop.f32.mrf.mxu0  ;;  %v891_v34 = vpop.f32.mrf.mxu1 }
 0x12d   : > { %v1592_v35 = vpack.c.bf16 %v993_v31, %v993_v31  ;;  %v1624_v36 = vpack.c.bf16 %v1025_v32, %v1025_v32  ;;  %v764_v37 = vadd.f32 %v1994_v17, %v763_v33  ;;  %v892_v38 = vadd.f32 %v1994_v17, %v891_v34 }
 0x12e   : > { %v765_v39 = vpop.f32.mrf.mxu0  ;;  %v893_v40 = vpop.f32.mrf.mxu1 }
 0x12f   : > { %1314 = vst.msk [vmem:[%s2002_s4 + $0x1c] sm:$0xf] %vm1306_vm0, %v1592_v35  ;;  %1346 = vst.msk [vmem:[%s2002_s4 + $0x9c] sm:$0xf] %vm1306_vm0, %v1624_v36  ;;  %v994_v41 = vmax.f32 %v764_v37, 0.0  ;;  %v1026_v42 = vmax.f32 %v892_v38, 0.0 }
 0x130   : > { %v766_v43 = vpop.f32.mrf.mxu0  ;;  %v894_v44 = vpop.f32.mrf.mxu1 }
 0x131   : > { %v1593_v45 = vpack.c.bf16 %v994_v41, %v994_v41  ;;  %v1625_v46 = vpack.c.bf16 %v1026_v42, %v1026_v42  ;;  %v767_v47 = vadd.f32 %v1994_v17, %v766_v43  ;;  %v895_v48 = vadd.f32 %v1994_v17, %v894_v44 }
 0x132   : > { %v768_v49 = vpop.f32.mrf.mxu0  ;;  %v896_v50 = vpop.f32.mrf.mxu1 }
 0x133   : > { %1315 = vst.msk [vmem:[%s2002_s4 + $0x20] sm:$0xf] %vm1306_vm0, %v1593_v45  ;;  %1347 = vst.msk [vmem:[%s2002_s4 + $0xa0] sm:$0xf] %vm1306_vm0, %v1625_v46  ;;  %v995_v51 = vmax.f32 %v767_v47, 0.0  ;;  %v1027_v52 = vmax.f32 %v895_v48, 0.0 }
 0x134   : > { %v771_v53 = vpop.f32.mrf.mxu0  ;;  %v899_v54 = vpop.f32.mrf.mxu1 }
 0x135   : > { %v1594_v55 = vpack.c.bf16 %v995_v51, %v995_v51  ;;  %v1626_v56 = vpack.c.bf16 %v1027_v52, %v1027_v52  ;;  %v772_v57 = vadd.f32 %v1994_v17, %v771_v53  ;;  %v900_v58 = vadd.f32 %v1994_v17, %v899_v54 }
 0x136   : > { %v773_v59 = vpop.f32.mrf.mxu0  ;;  %v901_v60 = vpop.f32.mrf.mxu1 }
 0x137   : > { %1316 = vst.msk [vmem:[%s2002_s4 + $0x24] sm:$0xf] %vm1306_vm0, %v1594_v55  ;;  %1348 = vst.msk [vmem:[%s2002_s4 + $0xa4] sm:$0xf] %vm1306_vm0, %v1626_v56  ;;  %v996_v61 = vmax.f32 %v772_v57, 0.0  ;;  %v1028_v62 = vmax.f32 %v900_v58, 0.0 }
 0x138   : > { %v774_v63 = vpop.f32.mrf.mxu0  ;;  %v902_v0 = vpop.f32.mrf.mxu1 }
 0x139   : > { %v1595_v1 = vpack.c.bf16 %v996_v61, %v996_v61  ;;  %v1627_v2 = vpack.c.bf16 %v1028_v62, %v1028_v62  ;;  %v775_v3 = vadd.f32 %v1994_v17, %v774_v63  ;;  %v903_v4 = vadd.f32 %v1994_v17, %v902_v0 }
 0x13a   : > { %v776_v5 = vpop.f32.mrf.mxu0  ;;  %v904_v6 = vpop.f32.mrf.mxu1 }
 0x13b   : > { %1317 = vst.msk [vmem:[%s2002_s4 + $0x28] sm:$0xf] %vm1306_vm0, %v1595_v1  ;;  %1349 = vst.msk [vmem:[%s2002_s4 + $0xa8] sm:$0xf] %vm1306_vm0, %v1627_v2  ;;  %v997_v7 = vmax.f32 %v775_v3, 0.0  ;;  %v1029_v8 = vmax.f32 %v903_v4, 0.0 }
 0x13c   : > { %v779_v9 = vpop.f32.mrf.mxu0  ;;  %v907_v10 = vpop.f32.mrf.mxu1 }
 0x13d   : > { %v1596_v11 = vpack.c.bf16 %v997_v7, %v997_v7  ;;  %v1628_v12 = vpack.c.bf16 %v1029_v8, %v1029_v8  ;;  %v780_v13 = vadd.f32 %v1994_v17, %v779_v9  ;;  %v908_v14 = vadd.f32 %v1994_v17, %v907_v10 }
 0x13e   : > { %v781_v15 = vpop.f32.mrf.mxu0  ;;  %v909_v16 = vpop.f32.mrf.mxu1 }
 0x13f   : > { %1318 = vst.msk [vmem:[%s2002_s4 + $0x2c] sm:$0xf] %vm1306_vm0, %v1596_v11  ;;  %1350 = vst.msk [vmem:[%s2002_s4 + $0xac] sm:$0xf] %vm1306_vm0, %v1628_v12  ;;  %v998_v18 = vmax.f32 %v780_v13, 0.0  ;;  %v1030_v19 = vmax.f32 %v908_v14, 0.0 }
 0x140   : > { %v782_v20 = vpop.f32.mrf.mxu0  ;;  %v910_v21 = vpop.f32.mrf.mxu1 }
 0x141   : > { %v1597_v22 = vpack.c.bf16 %v998_v18, %v998_v18  ;;  %v1629_v23 = vpack.c.bf16 %v1030_v19, %v1030_v19  ;;  %v783_v24 = vadd.f32 %v1994_v17, %v782_v20  ;;  %v911_v25 = vadd.f32 %v1994_v17, %v910_v21 }
 0x142   : > { %v784_v26 = vpop.f32.mrf.mxu0  ;;  %v912_v27 = vpop.f32.mrf.mxu1 }
 0x143   : > { %1319 = vst.msk [vmem:[%s2002_s4 + $0x30] sm:$0xf] %vm1306_vm0, %v1597_v22  ;;  %1351 = vst.msk [vmem:[%s2002_s4 + $0xb0] sm:$0xf] %vm1306_vm0, %v1629_v23  ;;  %v999_v28 = vmax.f32 %v783_v24, 0.0  ;;  %v1031_v29 = vmax.f32 %v911_v25, 0.0 }
 0x144   : > { %v787_v30 = vpop.f32.mrf.mxu0  ;;  %v915_v31 = vpop.f32.mrf.mxu1 }
 0x145   : > { %v1598_v32 = vpack.c.bf16 %v999_v28, %v999_v28  ;;  %v1630_v33 = vpack.c.bf16 %v1031_v29, %v1031_v29  ;;  %v788_v34 = vadd.f32 %v1994_v17, %v787_v30  ;;  %v916_v35 = vadd.f32 %v1994_v17, %v915_v31 }
 0x146   : > { %v789_v36 = vpop.f32.mrf.mxu0  ;;  %v917_v37 = vpop.f32.mrf.mxu1 }
 0x147   : > { %1320 = vst.msk [vmem:[%s2002_s4 + $0x34] sm:$0xf] %vm1306_vm0, %v1598_v32  ;;  %1352 = vst.msk [vmem:[%s2002_s4 + $0xb4] sm:$0xf] %vm1306_vm0, %v1630_v33  ;;  %v1000_v38 = vmax.f32 %v788_v34, 0.0  ;;  %v1032_v39 = vmax.f32 %v916_v35, 0.0 }
 0x148   : > { %v790_v40 = vpop.f32.mrf.mxu0  ;;  %v918_v41 = vpop.f32.mrf.mxu1 }
 0x149   : > { %v1599_v42 = vpack.c.bf16 %v1000_v38, %v1000_v38  ;;  %v1631_v43 = vpack.c.bf16 %v1032_v39, %v1032_v39  ;;  %v791_v44 = vadd.f32 %v1994_v17, %v790_v40  ;;  %v919_v45 = vadd.f32 %v1994_v17, %v918_v41 }
 0x14a   : > { %v792_v46 = vpop.f32.mrf.mxu0  ;;  %v920_v47 = vpop.f32.mrf.mxu1 }
 0x14b   : > { %1321 = vst.msk [vmem:[%s2002_s4 + $0x38] sm:$0xf] %vm1306_vm0, %v1599_v42  ;;  %1353 = vst.msk [vmem:[%s2002_s4 + $0xb8] sm:$0xf] %vm1306_vm0, %v1631_v43  ;;  %v1001_v48 = vmax.f32 %v791_v44, 0.0  ;;  %v1033_v49 = vmax.f32 %v919_v45, 0.0 }
 0x14c   : > { %v795_v50 = vpop.f32.mrf.mxu0  ;;  %v923_v51 = vpop.f32.mrf.mxu1 }
 0x14d   : > { %v1600_v52 = vpack.c.bf16 %v1001_v48, %v1001_v48  ;;  %v1632_v53 = vpack.c.bf16 %v1033_v49, %v1033_v49  ;;  %v796_v54 = vadd.f32 %v1994_v17, %v795_v50  ;;  %v924_v55 = vadd.f32 %v1994_v17, %v923_v51 }
 0x14e   : > { %v797_v56 = vpop.f32.mrf.mxu0  ;;  %v925_v57 = vpop.f32.mrf.mxu1 }
 0x14f   : > { %1322 = vst.msk [vmem:[%s2002_s4 + $0x3c] sm:$0xf] %vm1306_vm0, %v1600_v52  ;;  %1354 = vst.msk [vmem:[%s2002_s4 + $0xbc] sm:$0xf] %vm1306_vm0, %v1632_v53  ;;  %v1002_v58 = vmax.f32 %v796_v54, 0.0  ;;  %v1034_v59 = vmax.f32 %v924_v55, 0.0 }
 0x150   : > { %v798_v60 = vpop.f32.mrf.mxu0  ;;  %v926_v61 = vpop.f32.mrf.mxu1 }
 0x151   : > { %v1601_v62 = vpack.c.bf16 %v1002_v58, %v1002_v58  ;;  %v1633_v63 = vpack.c.bf16 %v1034_v59, %v1034_v59  ;;  %v799_v0 = vadd.f32 %v1994_v17, %v798_v60  ;;  %v927_v1 = vadd.f32 %v1994_v17, %v926_v61 }
 0x152   : > { %v800_v2 = vpop.f32.mrf.mxu0  ;;  %v928_v3 = vpop.f32.mrf.mxu1 }
 0x153   : > { %1323 = vst.msk [vmem:[%s2002_s4 + $0x40] sm:$0xf] %vm1306_vm0, %v1601_v62  ;;  %1355 = vst.msk [vmem:[%s2002_s4 + $0xc0] sm:$0xf] %vm1306_vm0, %v1633_v63  ;;  %v1003_v4 = vmax.f32 %v799_v0, 0.0  ;;  %v1035_v5 = vmax.f32 %v927_v1, 0.0 }
 0x154   : > { %v803_v6 = vpop.f32.mrf.mxu0  ;;  %v931_v7 = vpop.f32.mrf.mxu1 }
 0x155   : > { %v1602_v8 = vpack.c.bf16 %v1003_v4, %v1003_v4  ;;  %v1634_v9 = vpack.c.bf16 %v1035_v5, %v1035_v5  ;;  %v804_v10 = vadd.f32 %v1994_v17, %v803_v6  ;;  %v932_v11 = vadd.f32 %v1994_v17, %v931_v7 }
 0x156   : > { %v805_v12 = vpop.f32.mrf.mxu0  ;;  %v933_v13 = vpop.f32.mrf.mxu1 }
 0x157   : > { %1324 = vst.msk [vmem:[%s2002_s4 + $0x44] sm:$0xf] %vm1306_vm0, %v1602_v8  ;;  %1356 = vst.msk [vmem:[%s2002_s4 + $0xc4] sm:$0xf] %vm1306_vm0, %v1634_v9  ;;  %v1004_v14 = vmax.f32 %v804_v10, 0.0  ;;  %v1036_v15 = vmax.f32 %v932_v11, 0.0 }
 0x158   : > { %v806_v16 = vpop.f32.mrf.mxu0  ;;  %v934_v18 = vpop.f32.mrf.mxu1 }
 0x159   : > { %v1603_v19 = vpack.c.bf16 %v1004_v14, %v1004_v14  ;;  %v1635_v20 = vpack.c.bf16 %v1036_v15, %v1036_v15  ;;  %v807_v21 = vadd.f32 %v1994_v17, %v806_v16  ;;  %v935_v22 = vadd.f32 %v1994_v17, %v934_v18 }
 0x15a   : > { %v808_v23 = vpop.f32.mrf.mxu0  ;;  %v936_v24 = vpop.f32.mrf.mxu1 }
 0x15b   : > { %1325 = vst.msk [vmem:[%s2002_s4 + $0x48] sm:$0xf] %vm1306_vm0, %v1603_v19  ;;  %1357 = vst.msk [vmem:[%s2002_s4 + $0xc8] sm:$0xf] %vm1306_vm0, %v1635_v20  ;;  %v1005_v25 = vmax.f32 %v807_v21, 0.0  ;;  %v1037_v26 = vmax.f32 %v935_v22, 0.0 }
 0x15c   : > { %v811_v27 = vpop.f32.mrf.mxu0  ;;  %v939_v28 = vpop.f32.mrf.mxu1 }
 0x15d   : > { %v1604_v29 = vpack.c.bf16 %v1005_v25, %v1005_v25  ;;  %v1636_v30 = vpack.c.bf16 %v1037_v26, %v1037_v26  ;;  %v812_v31 = vadd.f32 %v1994_v17, %v811_v27  ;;  %v940_v32 = vadd.f32 %v1994_v17, %v939_v28 }
 0x15e   : > { %v813_v33 = vpop.f32.mrf.mxu0  ;;  %v941_v34 = vpop.f32.mrf.mxu1 }
 0x15f   : > { %1326 = vst.msk [vmem:[%s2002_s4 + $0x4c] sm:$0xf] %vm1306_vm0, %v1604_v29  ;;  %1358 = vst.msk [vmem:[%s2002_s4 + $0xcc] sm:$0xf] %vm1306_vm0, %v1636_v30  ;;  %v1006_v35 = vmax.f32 %v812_v31, 0.0  ;;  %v1038_v36 = vmax.f32 %v940_v32, 0.0 }
 0x160   : > { %v814_v37 = vpop.f32.mrf.mxu0  ;;  %v942_v38 = vpop.f32.mrf.mxu1 }
 0x161   : > { %v1605_v39 = vpack.c.bf16 %v1006_v35, %v1006_v35  ;;  %v1637_v40 = vpack.c.bf16 %v1038_v36, %v1038_v36  ;;  %v815_v41 = vadd.f32 %v1994_v17, %v814_v37  ;;  %v943_v42 = vadd.f32 %v1994_v17, %v942_v38 }
 0x162   : > { %v816_v43 = vpop.f32.mrf.mxu0  ;;  %v944_v44 = vpop.f32.mrf.mxu1 }
 0x163   : > { %1327 = vst.msk [vmem:[%s2002_s4 + $0x50] sm:$0xf] %vm1306_vm0, %v1605_v39  ;;  %1359 = vst.msk [vmem:[%s2002_s4 + $0xd0] sm:$0xf] %vm1306_vm0, %v1637_v40  ;;  %v1007_v45 = vmax.f32 %v815_v41, 0.0  ;;  %v1039_v46 = vmax.f32 %v943_v42, 0.0 }
 0x164   : > { %v819_v47 = vpop.f32.mrf.mxu0  ;;  %v947_v48 = vpop.f32.mrf.mxu1 }
 0x165   : > { %v1606_v49 = vpack.c.bf16 %v1007_v45, %v1007_v45  ;;  %v1638_v50 = vpack.c.bf16 %v1039_v46, %v1039_v46  ;;  %v820_v51 = vadd.f32 %v1994_v17, %v819_v47  ;;  %v948_v52 = vadd.f32 %v1994_v17, %v947_v48 }
 0x166   : > { %v821_v53 = vpop.f32.mrf.mxu0  ;;  %v949_v54 = vpop.f32.mrf.mxu1 }
 0x167   : > { %1328 = vst.msk [vmem:[%s2002_s4 + $0x54] sm:$0xf] %vm1306_vm0, %v1606_v49  ;;  %1360 = vst.msk [vmem:[%s2002_s4 + $0xd4] sm:$0xf] %vm1306_vm0, %v1638_v50  ;;  %v1008_v55 = vmax.f32 %v820_v51, 0.0  ;;  %v1040_v56 = vmax.f32 %v948_v52, 0.0 }
 0x168   : > { %v822_v57 = vpop.f32.mrf.mxu0  ;;  %v950_v58 = vpop.f32.mrf.mxu1 }
 0x169   : > { %v1607_v59 = vpack.c.bf16 %v1008_v55, %v1008_v55  ;;  %v1639_v60 = vpack.c.bf16 %v1040_v56, %v1040_v56  ;;  %v823_v61 = vadd.f32 %v1994_v17, %v822_v57  ;;  %v951_v62 = vadd.f32 %v1994_v17, %v950_v58 }
 0x16a   : > { %v824_v63 = vpop.f32.mrf.mxu0  ;;  %v952_v0 = vpop.f32.mrf.mxu1 }
 0x16b   : > { %1329 = vst.msk [vmem:[%s2002_s4 + $0x58] sm:$0xf] %vm1306_vm0, %v1607_v59  ;;  %1361 = vst.msk [vmem:[%s2002_s4 + $0xd8] sm:$0xf] %vm1306_vm0, %v1639_v60  ;;  %v1009_v1 = vmax.f32 %v823_v61, 0.0  ;;  %v1041_v2 = vmax.f32 %v951_v62, 0.0 }
 0x16c   : > { %v827_v3 = vpop.f32.mrf.mxu0  ;;  %v955_v4 = vpop.f32.mrf.mxu1 }
 0x16d   : > { %v1608_v5 = vpack.c.bf16 %v1009_v1, %v1009_v1  ;;  %v1640_v6 = vpack.c.bf16 %v1041_v2, %v1041_v2  ;;  %v828_v7 = vadd.f32 %v1994_v17, %v827_v3  ;;  %v956_v8 = vadd.f32 %v1994_v17, %v955_v4 }
 0x16e   : > { %v829_v9 = vpop.f32.mrf.mxu0  ;;  %v957_v10 = vpop.f32.mrf.mxu1 }
 0x16f   : > { %1330 = vst.msk [vmem:[%s2002_s4 + $0x5c] sm:$0xf] %vm1306_vm0, %v1608_v5  ;;  %1362 = vst.msk [vmem:[%s2002_s4 + $0xdc] sm:$0xf] %vm1306_vm0, %v1640_v6  ;;  %v1010_v11 = vmax.f32 %v828_v7, 0.0  ;;  %v1042_v12 = vmax.f32 %v956_v8, 0.0 }
 0x170   : > { %v830_v13 = vpop.f32.mrf.mxu0  ;;  %v958_v14 = vpop.f32.mrf.mxu1 }
 0x171   : > { %v1609_v15 = vpack.c.bf16 %v1010_v11, %v1010_v11  ;;  %v1641_v16 = vpack.c.bf16 %v1042_v12, %v1042_v12  ;;  %v831_v18 = vadd.f32 %v1994_v17, %v830_v13  ;;  %v959_v19 = vadd.f32 %v1994_v17, %v958_v14 }
 0x172   : > { %v832_v20 = vpop.f32.mrf.mxu0  ;;  %v960_v21 = vpop.f32.mrf.mxu1 }
 0x173   : > { %1331 = vst.msk [vmem:[%s2002_s4 + $0x60] sm:$0xf] %vm1306_vm0, %v1609_v15  ;;  %1363 = vst.msk [vmem:[%s2002_s4 + $0xe0] sm:$0xf] %vm1306_vm0, %v1641_v16  ;;  %v1011_v22 = vmax.f32 %v831_v18, 0.0  ;;  %v1043_v23 = vmax.f32 %v959_v19, 0.0 }
 0x174   : > { %v835_v24 = vpop.f32.mrf.mxu0  ;;  %v963_v25 = vpop.f32.mrf.mxu1 }
 0x175   : > { %v1610_v26 = vpack.c.bf16 %v1011_v22, %v1011_v22  ;;  %v1642_v27 = vpack.c.bf16 %v1043_v23, %v1043_v23  ;;  %v836_v28 = vadd.f32 %v1994_v17, %v835_v24  ;;  %v964_v29 = vadd.f32 %v1994_v17, %v963_v25 }
 0x176   : > { %v837_v30 = vpop.f32.mrf.mxu0  ;;  %v965_v31 = vpop.f32.mrf.mxu1 }
 0x177   : > { %1332 = vst.msk [vmem:[%s2002_s4 + $0x64] sm:$0xf] %vm1306_vm0, %v1610_v26  ;;  %1364 = vst.msk [vmem:[%s2002_s4 + $0xe4] sm:$0xf] %vm1306_vm0, %v1642_v27  ;;  %v1012_v32 = vmax.f32 %v836_v28, 0.0  ;;  %v1044_v33 = vmax.f32 %v964_v29, 0.0 }
 0x178   : > { %v838_v34 = vpop.f32.mrf.mxu0  ;;  %v966_v35 = vpop.f32.mrf.mxu1 }
 0x179   : > { %v1611_v36 = vpack.c.bf16 %v1012_v32, %v1012_v32  ;;  %v1643_v37 = vpack.c.bf16 %v1044_v33, %v1044_v33  ;;  %v839_v38 = vadd.f32 %v1994_v17, %v838_v34  ;;  %v967_v39 = vadd.f32 %v1994_v17, %v966_v35 }
 0x17a   : > { %v840_v40 = vpop.f32.mrf.mxu0  ;;  %v968_v41 = vpop.f32.mrf.mxu1 }
 0x17b   : > { %1333 = vst.msk [vmem:[%s2002_s4 + $0x68] sm:$0xf] %vm1306_vm0, %v1611_v36  ;;  %1365 = vst.msk [vmem:[%s2002_s4 + $0xe8] sm:$0xf] %vm1306_vm0, %v1643_v37  ;;  %v1013_v42 = vmax.f32 %v839_v38, 0.0  ;;  %v1045_v43 = vmax.f32 %v967_v39, 0.0 }
 0x17c   : > { %v843_v44 = vpop.f32.mrf.mxu0  ;;  %v971_v45 = vpop.f32.mrf.mxu1 }
 0x17d   : > { %v1612_v46 = vpack.c.bf16 %v1013_v42, %v1013_v42  ;;  %v1644_v47 = vpack.c.bf16 %v1045_v43, %v1045_v43  ;;  %v844_v48 = vadd.f32 %v1994_v17, %v843_v44  ;;  %v972_v49 = vadd.f32 %v1994_v17, %v971_v45 }
 0x17e   : > { %v845_v50 = vpop.f32.mrf.mxu0  ;;  %v973_v51 = vpop.f32.mrf.mxu1 }
 0x17f   : > { %1334 = vst.msk [vmem:[%s2002_s4 + $0x6c] sm:$0xf] %vm1306_vm0, %v1612_v46  ;;  %1366 = vst.msk [vmem:[%s2002_s4 + $0xec] sm:$0xf] %vm1306_vm0, %v1644_v47  ;;  %v1014_v52 = vmax.f32 %v844_v48, 0.0  ;;  %v1046_v53 = vmax.f32 %v972_v49, 0.0 }
 0x180   : > { %v846_v54 = vpop.f32.mrf.mxu0  ;;  %v974_v55 = vpop.f32.mrf.mxu1 }
 0x181   : > { %v1613_v56 = vpack.c.bf16 %v1014_v52, %v1014_v52  ;;  %v1645_v57 = vpack.c.bf16 %v1046_v53, %v1046_v53  ;;  %v847_v58 = vadd.f32 %v1994_v17, %v846_v54  ;;  %v975_v59 = vadd.f32 %v1994_v17, %v974_v55 }
 0x182   : > { %v848_v60 = vpop.f32.mrf.mxu0  ;;  %v976_v61 = vpop.f32.mrf.mxu1 }
 0x183   : > { %1335 = vst.msk [vmem:[%s2002_s4 + $0x70] sm:$0xf] %vm1306_vm0, %v1613_v56  ;;  %1367 = vst.msk [vmem:[%s2002_s4 + $0xf0] sm:$0xf] %vm1306_vm0, %v1645_v57  ;;  %v1015_v62 = vmax.f32 %v847_v58, 0.0  ;;  %v1047_v63 = vmax.f32 %v975_v59, 0.0 }
 0x184   : > { %v851_v0 = vpop.f32.mrf.mxu0  ;;  %v979_v1 = vpop.f32.mrf.mxu1 }
 0x185   : > { %v1614_v2 = vpack.c.bf16 %v1015_v62, %v1015_v62  ;;  %v1646_v3 = vpack.c.bf16 %v1047_v63, %v1047_v63  ;;  %v852_v4 = vadd.f32 %v1994_v17, %v851_v0  ;;  %v980_v5 = vadd.f32 %v1994_v17, %v979_v1 }
 0x186   : > { %v853_v6 = vpop.f32.mrf.mxu0  ;;  %v981_v7 = vpop.f32.mrf.mxu1 }
 0x187   : > { %1336 = vst.msk [vmem:[%s2002_s4 + $0x74] sm:$0xf] %vm1306_vm0, %v1614_v2  ;;  %1368 = vst.msk [vmem:[%s2002_s4 + $0xf4] sm:$0xf] %vm1306_vm0, %v1646_v3  ;;  %v1016_v8 = vmax.f32 %v852_v4, 0.0  ;;  %v1048_v9 = vmax.f32 %v980_v5, 0.0 }
 0x188   : > { %v854_v10 = vpop.f32.mrf.mxu0  ;;  %v982_v11 = vpop.f32.mrf.mxu1 }
 0x189   : > { %v1615_v12 = vpack.c.bf16 %v1016_v8, %v1016_v8  ;;  %v1647_v13 = vpack.c.bf16 %v1048_v9, %v1048_v9  ;;  %v855_v14 = vadd.f32 %v1994_v17, %v854_v10  ;;  %v983_v15 = vadd.f32 %v1994_v17, %v982_v11 }
 0x18a   : > { %v856_v16 = vpop.f32.mrf.mxu0  ;;  %v984_v18 = vpop.f32.mrf.mxu1 }
 0x18b   : > { %1337 = vst.msk [vmem:[%s2002_s4 + $0x78] sm:$0xf] %vm1306_vm0, %v1615_v12  ;;  %1369 = vst.msk [vmem:[%s2002_s4 + $0xf8] sm:$0xf] %vm1306_vm0, %v1647_v13  ;;  %v1017_v19 = vmax.f32 %v855_v14, 0.0  ;;  %v1049_v20 = vmax.f32 %v983_v15, 0.0 }
 0x18d   : > { %v1616_v21 = vpack.c.bf16 %v1017_v19, %v1017_v19  ;;  %v1648_v22 = vpack.c.bf16 %v1049_v20, %v1049_v20 }
 0x18f   : > { %1338 = vst.msk [vmem:[%s2002_s4 + $0x7c] sm:$0xf] %vm1306_vm0, %v1616_v21  ;;  %1370 = vst.msk [vmem:[%s2002_s4 + $0xfc] sm:$0xf] %vm1306_vm0, %v1648_v22 }
 0x190 PF: > { %s13_s12 = sadd.s32 1, %s1808_s12  }
 0x191   : > { %p10_p4 = scmp.ge.s32.totalorder %s13_s12, 4  }
 0x193   :  { %12 = sbr.rel (!%p10_p4) target bundleno = 1 (0x1), region = 62 }

// kernel: policy_forward.4
= control target key start
LH: loop header
LB: loop body
LE: loop exit
PB: predicated region body
PF: predicated region fallthrough
CT: control target
= control target key end

     0   :  { %vm880_vm0 = vcmask 519168   ;;  %s1637_s1 = inlined_call_operand.vmem [shape: bf16[512,64], index: 1, kind: input, shape index: {}]   ;;  %s1638_s0 = inlined_call_operand.vmem [shape: bf16[168,512], index: 0, kind: input, shape index: {}]   ;;  %s1639_s2 = inlined_call_operand.vmem [shape: f32[1,64], index: 2, kind: input, shape index: {}]   ;;  %s1640_s3 = inlined_call_operand.vmem [shape: bf16[168,64], index: 3, kind: output, shape index: {}]  }
   0x1   :  { %v1189_v0 = vld [vmem:[%s1637_s1 + $0x78] sm:$0xff]   ;;  %v1193_v4 = vld [vmem:[%s1637_s1 + $0x70] sm:$0xff]   ;;  %v1197_v8 = vld [vmem:[%s1637_s1 + $0x68] sm:$0xff]  }
   0x2   :  { %v1190_v1 = vld [vmem:[%s1637_s1 + $0xf8] sm:$0xff]   ;;  %1025 = vmatprep.subr.bf16.mxu0 %v1189_v0  ;;  %v1194_v5 = vld [vmem:[%s1637_s1 + $0xf0] sm:$0xff]   ;;  %v1198_v9 = vld [vmem:[%s1637_s1 + $0xe8] sm:$0xff]  }
   0x3   :  { %v1191_v2 = vld [vmem:[%s1637_s1 + $0x38] sm:$0xff]   ;;  %1107 = vmatprep.subr.bf16.mxu1 %v1190_v1  ;;  %v1195_v6 = vld [vmem:[%s1637_s1 + $0x30] sm:$0xff]   ;;  %v1199_v10 = vld [vmem:[%s1637_s1 + $0x28] sm:$0xff]  }
   0x4   :  { %v1192_v3 = vld [vmem:[%s1637_s1 + $0xb8] sm:$0xff]   ;;  %1026 = vmatpush3.bf16.msra.mxu0 %v1191_v2  ;;  %v1196_v7 = vld [vmem:[%s1637_s1 + $0xb0] sm:$0xff]   ;;  %v1200_v11 = vld [vmem:[%s1637_s1 + $0xa8] sm:$0xff]  }
   0x5   :  { %1108 = vmatpush3.bf16.msra.mxu1 %v1192_v3  ;;  %1027 = vmatprep.subr.bf16.mxu0 %v1193_v4  ;;  %v1201_v12 = vld [vmem:[%s1637_s1 + $0x60] sm:$0xff]   ;;  %v1205_v16 = vld [vmem:[%s1637_s1 + $0x58] sm:$0xff]   ;;  %v1209_v20 = vld [vmem:[%s1637_s1 + $0x50] sm:$0xff]  }
   0x6   :  { %1109 = vmatprep.subr.bf16.mxu1 %v1194_v5  ;;  %v1202_v13 = vld [vmem:[%s1637_s1 + $0xe0] sm:$0xff]   ;;  %v1206_v17 = vld [vmem:[%s1637_s1 + $0xd8] sm:$0xff]   ;;  %v1210_v21 = vld [vmem:[%s1637_s1 + $0xd0] sm:$0xff]  }
   0x7   :  { %v1203_v14 = vld [vmem:[%s1637_s1 + $0x20] sm:$0xff]   ;;  %v1207_v18 = vld [vmem:[%s1637_s1 + $0x18] sm:$0xff]   ;;  %v1211_v22 = vld [vmem:[%s1637_s1 + $0x10] sm:$0xff]  }
   0x8   :  { %1028 = vmatpush3.bf16.msra.mxu0 %v1195_v6  ;;  %v1204_v15 = vld [vmem:[%s1637_s1 + $0xa0] sm:$0xff]   ;;  %v1208_v19 = vld [vmem:[%s1637_s1 + $0x98] sm:$0xff]   ;;  %v1212_v23 = vld [vmem:[%s1637_s1 + $0x90] sm:$0xff]  }
   0x9   :  { %1110 = vmatpush3.bf16.msra.mxu1 %v1196_v7  ;;  %1029 = vmatprep.subr.bf16.mxu0 %v1197_v8  ;;  %v1213_v24 = vld [vmem:[%s1637_s1 + $0x48] sm:$0xff]   ;;  %v1217_v28 = vld [vmem:[%s1637_s1 + $0x40] sm:$0xff]  }
   0xa   :  { %1111 = vmatprep.subr.bf16.mxu1 %v1198_v9  ;;  %v1214_v25 = vld [vmem:[%s1637_s1 + $0xc8] sm:$0xff]   ;;  %v1218_v29 = vld [vmem:[%s1637_s1 + $0xc0] sm:$0xff]  }
   0xb   :  { %v1215_v26 = vld [vmem:[%s1637_s1 + $0x8] sm:$0xff]   ;;  %v1219_v30 = vld [vmem:[%s1637_s1] sm:$0xff]  }
   0xc   :  { %1030 = vmatpush3.bf16.msra.mxu0 %v1199_v10  ;;  %v1216_v27 = vld [vmem:[%s1637_s1 + $0x88] sm:$0xff]   ;;  %v1220_v31 = vld [vmem:[%s1637_s1 + $0x80] sm:$0xff]  }
   0xd   :  { %1112 = vmatpush3.bf16.msra.mxu1 %v1200_v11  ;;  %1031 = vmatprep.subr.bf16.mxu0 %v1201_v12  ;;  %v1221_v32 = vld [vmem:[%s1638_s0] ss:$16 sps:$4 sm:$0xff]   ;;  %v1223_v33 = vld [vmem:[%s1638_s0 + $0x4] ss:$16 sps:$4 sm:$0xff]   ;;  %v1224_v34 = vld [vmem:[%s1638_s0 + $0x8] ss:$16 sps:$4 sm:$0xff]  }
   0xe   :  { %1113 = vmatprep.subr.bf16.mxu1 %v1202_v13  ;;  %v1226_v35 = vld [vmem:[%s1638_s0 + $0xc] ss:$16 sps:$4 sm:$0xff]   ;;  %566 = vmatprep.mubr.bf16.mxu0 %v1223_v33  ;;  %v1227_v36 = vld [vmem:[%s1638_s0 + $0x24] ss:$16 sps:$4 sm:$0xff]   ;;  %v1231_v38 = vld [vmem:[%s1638_s0 + $0x20] ss:$16 sps:$4 sm:$0xff]  }
   0xf   :  { %686 = vmatprep.mubr.bf16.mxu1 %v1226_v35  ;;  %v1229_v37 = vld [vmem:[%s1638_s0 + $0x2c] ss:$16 sps:$4 sm:$0xff]   ;;  %v1232_v39 = vld [vmem:[%s1638_s0 + $0x28] ss:$16 sps:$4 sm:$0xff]   ;;  %v1233_v40 = vld [vmem:[%s1638_s0 + $0x44] ss:$16 sps:$4 sm:$0xff]  }
  0x10   :  { %1032 = vmatpush3.bf16.msra.mxu0 %v1203_v14  ;;  %v1235_v41 = vld [vmem:[%s1638_s0 + $0x4c] ss:$16 sps:$4 sm:$0xff]   ;;  %v1237_v42 = vld [vmem:[%s1638_s0 + $0x40] ss:$16 sps:$4 sm:$0xff]   ;;  %v1238_v43 = vld [vmem:[%s1638_s0 + $0x48] ss:$16 sps:$4 sm:$0xff]  }
  0x11   :  { %1114 = vmatpush3.bf16.msra.mxu1 %v1204_v15  ;;  %1033 = vmatprep.subr.bf16.mxu0 %v1205_v16  ;;  %v1239_v44 = vld [vmem:[%s1638_s0 + $0x64] ss:$16 sps:$4 sm:$0xff]   ;;  %v1241_v45 = vld [vmem:[%s1638_s0 + $0x6c] ss:$16 sps:$4 sm:$0xff]   ;;  %v1243_v46 = vld [vmem:[%s1638_s0 + $0x60] ss:$16 sps:$4 sm:$0xff]  }
  0x12   :  { %1115 = vmatprep.subr.bf16.mxu1 %v1206_v17  ;;  %v1244_v47 = vld [vmem:[%s1638_s0 + $0x68] ss:$16 sps:$4 sm:$0xff]   ;;  %v1245_v48 = vld [vmem:[%s1638_s0 + $0x84] ss:$16 sps:$4 sm:$0xff]   ;;  %v1247_v49 = vld [vmem:[%s1638_s0 + $0x8c] ss:$16 sps:$4 sm:$0xff]  }
  0x13   :  { %v1249_v50 = vld [vmem:[%s1638_s0 + $0x80] ss:$16 sps:$4 sm:$0xff]   ;;  %v1250_v51 = vld [vmem:[%s1638_s0 + $0x88] ss:$16 sps:$4 sm:$0xff]   ;;  %v1251_v52 = vld [vmem:[%s1638_s0 + $0xa4] ss:$16 sps:$4 sm:$0xff]  }
  0x14   :  { %1034 = vmatpush3.bf16.msra.mxu0 %v1207_v18  ;;  %v1253_v53 = vld [vmem:[%s1638_s0 + $0xac] ss:$16 sps:$4 sm:$0xff]   ;;  %v1255_v54 = vld [vmem:[%s1638_s0 + $0xa0] ss:$16 sps:$4 sm:$0xff]   ;;  %v1256_v55 = vld [vmem:[%s1638_s0 + $0xa8] ss:$16 sps:$4 sm:$0xff]  }
  0x15   :  { %1116 = vmatpush3.bf16.msra.mxu1 %v1208_v19  ;;  %1035 = vmatprep.subr.bf16.mxu0 %v1209_v20  ;;  %v1257_v56 = vld [vmem:[%s1638_s0 + $0xc4] ss:$16 sps:$4 sm:$0xff]   ;;  %v1259_v57 = vld [vmem:[%s1638_s0 + $0xcc] ss:$16 sps:$4 sm:$0xff]   ;;  %v1261_v58 = vld [vmem:[%s1638_s0 + $0xc0] ss:$16 sps:$4 sm:$0xff]  }
  0x16   :  { %1117 = vmatprep.subr.bf16.mxu1 %v1210_v21  ;;  %v1262_v59 = vld [vmem:[%s1638_s0 + $0xc8] ss:$16 sps:$4 sm:$0xff]   ;;  %v1263_v60 = vld [vmem:[%s1638_s0 + $0xe4] ss:$16 sps:$4 sm:$0xff]   ;;  %v1265_v61 = vld [vmem:[%s1638_s0 + $0xec] ss:$16 sps:$4 sm:$0xff]  }
  0x17   :  { %v1267_v62 = vld [vmem:[%s1638_s0 + $0xe0] ss:$16 sps:$4 sm:$0xff]   ;;  %v1268_v63 = vld [vmem:[%s1638_s0 + $0xe8] ss:$16 sps:$4 sm:$0xff]   ;;  %v1269_v0 = vld [vmem:[%s1638_s0 + $0x104] ss:$16 sps:$4 sm:$0xff]  }
  0x18   :  { %1036 = vmatpush3.bf16.msra.mxu0 %v1211_v22  ;;  %v1271_v1 = vld [vmem:[%s1638_s0 + $0x10c] ss:$16 sps:$4 sm:$0xff]   ;;  %v1273_v2 = vld [vmem:[%s1638_s0 + $0x100] ss:$16 sps:$4 sm:$0xff]   ;;  %v1274_v3 = vld [vmem:[%s1638_s0 + $0x108] ss:$16 sps:$4 sm:$0xff]  }
  0x19   :  { %1118 = vmatpush3.bf16.msra.mxu1 %v1212_v23  ;;  %1037 = vmatprep.subr.bf16.mxu0 %v1213_v24  ;;  %v1275_v4 = vld [vmem:[%s1638_s0 + $0x124] ss:$16 sps:$4 sm:$0xff]   ;;  %v1277_v5 = vld [vmem:[%s1638_s0 + $0x12c] ss:$16 sps:$4 sm:$0xff]   ;;  %v1279_v8 = vld [vmem:[%s1638_s0 + $0x120] ss:$16 sps:$4 sm:$0xff]  }
  0x1a   :  { %1119 = vmatprep.subr.bf16.mxu1 %v1214_v25  ;;  %v55_v6 = vld [vmem:[%s1638_s0 + $0x140] sm:$0xff]  ;;  %v56_v7 = vld [vmem:[%s1638_s0 + $0x148] sm:$0xff] }
  0x1b   :  { %v1280_v9 = vld [vmem:[%s1638_s0 + $0x128] ss:$16 sps:$4 sm:$0xff]   ;;  %v948_v10 = vcombine.high %v55_v6, %v55_v6  ;;  %v950_v11 = vcombine.high %v56_v7, %v56_v7  ;;  %v947_v12 = vcombine.low %v55_v6, %v55_v6  ;;  %v949_v13 = vcombine.low %v56_v7, %v56_v7  ;;  %v1530_v16 = vld [vmem:[%s1639_s2] ss:$0 sm:$0xff] }
  0x1c   :  { %1038 = vmatpush3.bf16.msra.mxu0 %v1215_v26 }
  0x1d   :  { %1120 = vmatpush3.bf16.msra.mxu1 %v1216_v27  ;;  %1039 = vmatprep.subr.bf16.mxu0 %v1217_v28 }
  0x1e   :  { %1121 = vmatprep.subr.bf16.mxu1 %v1218_v29 }
  0x20   :  { %1040 = vmatpush3.bf16.msra.mxu0 %v1219_v30 }
  0x21   :  { %1122 = vmatpush3.bf16.msra.mxu1 %v1220_v31 }
  0x23   :  { %567 = vmatmul.mubr.bf16.vlgmr.msra.gmra.mxu0 %v1221_v32 }
  0x24   :  { %687 = vmatmul.mubr.bf16.vlgmr.msra.gmra.mxu1 %v1224_v34  ;;  %574 = vmatprep.mubr.bf16.mxu0 %v1227_v36 }
  0x25   :  { %694 = vmatprep.mubr.bf16.mxu1 %v1229_v37 }
  0x2b   :  { %575 = vmatmul.mubr.bf16.gmra.mxu0 %v1231_v38 }
  0x2c   :  { %695 = vmatmul.mubr.bf16.gmra.mxu1 %v1232_v39  ;;  %582 = vmatprep.mubr.bf16.mxu0 %v1233_v40 }
  0x2d   :  { %702 = vmatprep.mubr.bf16.mxu1 %v1235_v41 }
  0x33   :  { %583 = vmatmul.mubr.bf16.gmra.mxu0 %v1237_v42 }
  0x34   :  { %703 = vmatmul.mubr.bf16.gmra.mxu1 %v1238_v43  ;;  %590 = vmatprep.mubr.bf16.mxu0 %v1239_v44 }
  0x35   :  { %710 = vmatprep.mubr.bf16.mxu1 %v1241_v45 }
  0x3b   :  { %591 = vmatmul.mubr.bf16.gmra.mxu0 %v1243_v46 }
  0x3c   :  { %711 = vmatmul.mubr.bf16.gmra.mxu1 %v1244_v47  ;;  %598 = vmatprep.mubr.bf16.mxu0 %v1245_v48 }
  0x3d   :  { %718 = vmatprep.mubr.bf16.mxu1 %v1247_v49 }
  0x43   :  { %599 = vmatmul.mubr.bf16.gmra.mxu0 %v1249_v50 }
  0x44   :  { %719 = vmatmul.mubr.bf16.gmra.mxu1 %v1250_v51  ;;  %606 = vmatprep.mubr.bf16.mxu0 %v1251_v52 }
  0x45   :  { %726 = vmatprep.mubr.bf16.mxu1 %v1253_v53 }
  0x4b   :  { %607 = vmatmul.mubr.bf16.gmra.mxu0 %v1255_v54 }
  0x4c   :  { %727 = vmatmul.mubr.bf16.gmra.mxu1 %v1256_v55  ;;  %614 = vmatprep.mubr.bf16.mxu0 %v1257_v56 }
  0x4d   :  { %734 = vmatprep.mubr.bf16.mxu1 %v1259_v57 }
  0x53   :  { %615 = vmatmul.mubr.bf16.gmra.mxu0 %v1261_v58 }
  0x54   :  { %735 = vmatmul.mubr.bf16.gmra.mxu1 %v1262_v59  ;;  %622 = vmatprep.mubr.bf16.mxu0 %v1263_v60 }
  0x55   :  { %742 = vmatprep.mubr.bf16.mxu1 %v1265_v61 }
  0x5b   :  { %623 = vmatmul.mubr.bf16.gmra.mxu0 %v1267_v62 }
  0x5c   :  { %743 = vmatmul.mubr.bf16.gmra.mxu1 %v1268_v63  ;;  %630 = vmatprep.mubr.bf16.mxu0 %v1269_v0 }
  0x5d   :  { %750 = vmatprep.mubr.bf16.mxu1 %v1271_v1 }
  0x63   :  { %631 = vmatmul.mubr.bf16.gmra.mxu0 %v1273_v2 }
  0x64   :  { %751 = vmatmul.mubr.bf16.gmra.mxu1 %v1274_v3  ;;  %638 = vmatprep.mubr.bf16.mxu0 %v1275_v4 }
  0x65   :  { %758 = vmatprep.mubr.bf16.mxu1 %v1277_v5 }
  0x6b   :  { %639 = vmatmul.mubr.bf16.gmra.mxu0 %v1279_v8 }
  0x6c   :  { %759 = vmatmul.mubr.bf16.gmra.mxu1 %v1280_v9  ;;  %646 = vmatprep.mubr.bf16.mxu0 %v948_v10 }
  0x6d   :  { %766 = vmatprep.mubr.bf16.mxu1 %v950_v11 }
  0x73   :  { %647 = vmatmul.mubr.bf16.gmra.mxu0 %v947_v12 }
  0x74   :  { %767 = vmatmul.mubr.bf16.gmra.mxu1 %v949_v13 }
  0xe3   :  { %v1041_v14 = vpop.f32.mrf.mxu0 }
  0xe4   :  { %v1123_v15 = vpop.f32.mrf.mxu1 }
  0xe5   :  { %v1042_v17 = vpop.f32.mrf.mxu0 }
  0xe6   :  { %v1043_v18 = vadd.f32 %v1042_v17, %v1041_v14  ;;  %v1124_v19 = vpop.f32.mrf.mxu1 }
  0xe7   :  { %v1044_v20 = vpop.f32.mrf.mxu0  ;;  %v1125_v22 = vadd.f32 %v1124_v19, %v1123_v15 }
  0xe8   :  { %v569_v21 = vadd.f32 %v1043_v18, %v1530_v16  ;;  %v1126_v23 = vpop.f32.mrf.mxu1 }
  0xe9   :  { %v1045_v24 = vpop.f32.mrf.mxu0 }
  0xea   :  { %v689_v25 = vadd.f32 %v1125_v22, %v569_v21  ;;  %v1046_v26 = vadd.f32 %v1045_v24, %v1044_v20  ;;  %v1127_v27 = vpop.f32.mrf.mxu1 }
  0xeb   :  { %v1047_v28 = vpop.f32.mrf.mxu0  ;;  %v1128_v31 = vadd.f32 %v1127_v27, %v1126_v23 }
  0xec   :  { %v774_v29 = vmax.f32 %v689_v25, 0.0  ;;  %v572_v30 = vadd.f32 %v1046_v26, %v1530_v16  ;;  %v1129_v32 = vpop.f32.mrf.mxu1 }
  0xed   :  { %v1048_v33 = vpop.f32.mrf.mxu0 }
  0xee   :  { %v1004_v34 = vpack.c.bf16 %v774_v29, %v774_v29  ;;  %v692_v35 = vadd.f32 %v1128_v31, %v572_v30  ;;  %v1049_v36 = vadd.f32 %v1048_v33, %v1047_v28  ;;  %v1130_v37 = vpop.f32.mrf.mxu1 }
  0xef   :  { %v1050_v38 = vpop.f32.mrf.mxu0  ;;  %v1131_v41 = vadd.f32 %v1130_v37, %v1129_v32 }
  0xf0   :  { %881 = vst.msk [vmem:[%s1640_s3] sm:$0xf] %vm880_vm0, %v1004_v34  ;;  %v775_v39 = vmax.f32 %v692_v35, 0.0  ;;  %v577_v40 = vadd.f32 %v1049_v36, %v1530_v16  ;;  %v1132_v42 = vpop.f32.mrf.mxu1 }
  0xf1   :  { %v1051_v43 = vpop.f32.mrf.mxu0 }
  0xf2   :  { %v1005_v44 = vpack.c.bf16 %v775_v39, %v775_v39  ;;  %v697_v45 = vadd.f32 %v1131_v41, %v577_v40  ;;  %v1052_v46 = vadd.f32 %v1051_v43, %v1050_v38  ;;  %v1133_v47 = vpop.f32.mrf.mxu1 }
  0xf3   :  { %v1053_v48 = vpop.f32.mrf.mxu0  ;;  %v1134_v51 = vadd.f32 %v1133_v47, %v1132_v42 }
  0xf4   :  { %882 = vst.msk [vmem:[%s1640_s3 + $0x4] sm:$0xf] %vm880_vm0, %v1005_v44  ;;  %v776_v49 = vmax.f32 %v697_v45, 0.0  ;;  %v580_v50 = vadd.f32 %v1052_v46, %v1530_v16  ;;  %v1135_v52 = vpop.f32.mrf.mxu1 }
  0xf5   :  { %v1054_v53 = vpop.f32.mrf.mxu0 }
  0xf6   :  { %v1006_v54 = vpack.c.bf16 %v776_v49, %v776_v49  ;;  %v700_v55 = vadd.f32 %v1134_v51, %v580_v50  ;;  %v1055_v56 = vadd.f32 %v1054_v53, %v1053_v48  ;;  %v1136_v57 = vpop.f32.mrf.mxu1 }
  0xf7   :  { %v1056_v58 = vpop.f32.mrf.mxu0  ;;  %v1137_v61 = vadd.f32 %v1136_v57, %v1135_v52 }
  0xf8   :  { %883 = vst.msk [vmem:[%s1640_s3 + $0x8] sm:$0xf] %vm880_vm0, %v1006_v54  ;;  %v777_v59 = vmax.f32 %v700_v55, 0.0  ;;  %v585_v60 = vadd.f32 %v1055_v56, %v1530_v16  ;;  %v1138_v62 = vpop.f32.mrf.mxu1 }
  0xf9   :  { %v1057_v63 = vpop.f32.mrf.mxu0 }
  0xfa   :  { %v1007_v0 = vpack.c.bf16 %v777_v59, %v777_v59  ;;  %v705_v1 = vadd.f32 %v1137_v61, %v585_v60  ;;  %v1058_v2 = vadd.f32 %v1057_v63, %v1056_v58  ;;  %v1139_v3 = vpop.f32.mrf.mxu1 }
  0xfb   :  { %v1059_v4 = vpop.f32.mrf.mxu0  ;;  %v1140_v7 = vadd.f32 %v1139_v3, %v1138_v62 }
  0xfc   :  { %884 = vst.msk [vmem:[%s1640_s3 + $0xc] sm:$0xf] %vm880_vm0, %v1007_v0  ;;  %v778_v5 = vmax.f32 %v705_v1, 0.0  ;;  %v588_v6 = vadd.f32 %v1058_v2, %v1530_v16  ;;  %v1141_v8 = vpop.f32.mrf.mxu1 }
  0xfd   :  { %v1060_v9 = vpop.f32.mrf.mxu0 }
  0xfe   :  { %v1008_v10 = vpack.c.bf16 %v778_v5, %v778_v5  ;;  %v708_v11 = vadd.f32 %v1140_v7, %v588_v6  ;;  %v1061_v12 = vadd.f32 %v1060_v9, %v1059_v4  ;;  %v1142_v13 = vpop.f32.mrf.mxu1 }
  0xff   :  { %v1062_v14 = vpop.f32.mrf.mxu0  ;;  %v1143_v18 = vadd.f32 %v1142_v13, %v1141_v8 }
 0x100   :  { %885 = vst.msk [vmem:[%s1640_s3 + $0x10] sm:$0xf] %vm880_vm0, %v1008_v10  ;;  %v779_v15 = vmax.f32 %v708_v11, 0.0  ;;  %v593_v17 = vadd.f32 %v1061_v12, %v1530_v16  ;;  %v1144_v19 = vpop.f32.mrf.mxu1 }
 0x101   :  { %v1063_v20 = vpop.f32.mrf.mxu0 }
 0x102   :  { %v1009_v21 = vpack.c.bf16 %v779_v15, %v779_v15  ;;  %v713_v22 = vadd.f32 %v1143_v18, %v593_v17  ;;  %v1064_v23 = vadd.f32 %v1063_v20, %v1062_v14  ;;  %v1145_v24 = vpop.f32.mrf.mxu1 }
 0x103   :  { %v1065_v25 = vpop.f32.mrf.mxu0  ;;  %v1146_v28 = vadd.f32 %v1145_v24, %v1144_v19 }
 0x104   :  { %886 = vst.msk [vmem:[%s1640_s3 + $0x14] sm:$0xf] %vm880_vm0, %v1009_v21  ;;  %v780_v26 = vmax.f32 %v713_v22, 0.0  ;;  %v596_v27 = vadd.f32 %v1064_v23, %v1530_v16  ;;  %v1147_v29 = vpop.f32.mrf.mxu1 }
 0x105   :  { %v1066_v30 = vpop.f32.mrf.mxu0 }
 0x106   :  { %v1010_v31 = vpack.c.bf16 %v780_v26, %v780_v26  ;;  %v716_v32 = vadd.f32 %v1146_v28, %v596_v27  ;;  %v1067_v33 = vadd.f32 %v1066_v30, %v1065_v25  ;;  %v1148_v34 = vpop.f32.mrf.mxu1 }
 0x107   :  { %v1068_v35 = vpop.f32.mrf.mxu0  ;;  %v1149_v38 = vadd.f32 %v1148_v34, %v1147_v29 }
 0x108   :  { %887 = vst.msk [vmem:[%s1640_s3 + $0x18] sm:$0xf] %vm880_vm0, %v1010_v31  ;;  %v781_v36 = vmax.f32 %v716_v32, 0.0  ;;  %v601_v37 = vadd.f32 %v1067_v33, %v1530_v16  ;;  %v1150_v39 = vpop.f32.mrf.mxu1 }
 0x109   :  { %v1069_v40 = vpop.f32.mrf.mxu0 }
 0x10a   :  { %v1011_v41 = vpack.c.bf16 %v781_v36, %v781_v36  ;;  %v721_v42 = vadd.f32 %v1149_v38, %v601_v37  ;;  %v1070_v43 = vadd.f32 %v1069_v40, %v1068_v35  ;;  %v1151_v44 = vpop.f32.mrf.mxu1 }
 0x10b   :  { %v1071_v45 = vpop.f32.mrf.mxu0  ;;  %v1152_v48 = vadd.f32 %v1151_v44, %v1150_v39 }
 0x10c   :  { %888 = vst.msk [vmem:[%s1640_s3 + $0x1c] sm:$0xf] %vm880_vm0, %v1011_v41  ;;  %v782_v46 = vmax.f32 %v721_v42, 0.0  ;;  %v604_v47 = vadd.f32 %v1070_v43, %v1530_v16  ;;  %v1153_v49 = vpop.f32.mrf.mxu1 }
 0x10d   :  { %v1072_v50 = vpop.f32.mrf.mxu0 }
 0x10e   :  { %v1012_v51 = vpack.c.bf16 %v782_v46, %v782_v46  ;;  %v724_v52 = vadd.f32 %v1152_v48, %v604_v47  ;;  %v1073_v53 = vadd.f32 %v1072_v50, %v1071_v45  ;;  %v1154_v54 = vpop.f32.mrf.mxu1 }
 0x10f   :  { %v1074_v55 = vpop.f32.mrf.mxu0  ;;  %v1155_v58 = vadd.f32 %v1154_v54, %v1153_v49 }
 0x110   :  { %889 = vst.msk [vmem:[%s1640_s3 + $0x20] sm:$0xf] %vm880_vm0, %v1012_v51  ;;  %v783_v56 = vmax.f32 %v724_v52, 0.0  ;;  %v609_v57 = vadd.f32 %v1073_v53, %v1530_v16  ;;  %v1156_v59 = vpop.f32.mrf.mxu1 }
 0x111   :  { %v1075_v60 = vpop.f32.mrf.mxu0 }
 0x112   :  { %v1013_v61 = vpack.c.bf16 %v783_v56, %v783_v56  ;;  %v729_v62 = vadd.f32 %v1155_v58, %v609_v57  ;;  %v1076_v63 = vadd.f32 %v1075_v60, %v1074_v55  ;;  %v1157_v0 = vpop.f32.mrf.mxu1 }
 0x113   :  { %v1077_v1 = vpop.f32.mrf.mxu0  ;;  %v1158_v4 = vadd.f32 %v1157_v0, %v1156_v59 }
 0x114   :  { %890 = vst.msk [vmem:[%s1640_s3 + $0x24] sm:$0xf] %vm880_vm0, %v1013_v61  ;;  %v784_v2 = vmax.f32 %v729_v62, 0.0  ;;  %v612_v3 = vadd.f32 %v1076_v63, %v1530_v16  ;;  %v1159_v5 = vpop.f32.mrf.mxu1 }
 0x115   :  { %v1078_v6 = vpop.f32.mrf.mxu0 }
 0x116   :  { %v1014_v7 = vpack.c.bf16 %v784_v2, %v784_v2  ;;  %v732_v8 = vadd.f32 %v1158_v4, %v612_v3  ;;  %v1079_v9 = vadd.f32 %v1078_v6, %v1077_v1  ;;  %v1160_v10 = vpop.f32.mrf.mxu1 }
 0x117   :  { %v1080_v11 = vpop.f32.mrf.mxu0  ;;  %v1161_v14 = vadd.f32 %v1160_v10, %v1159_v5 }
 0x118   :  { %891 = vst.msk [vmem:[%s1640_s3 + $0x28] sm:$0xf] %vm880_vm0, %v1014_v7  ;;  %v785_v12 = vmax.f32 %v732_v8, 0.0  ;;  %v617_v13 = vadd.f32 %v1079_v9, %v1530_v16  ;;  %v1162_v15 = vpop.f32.mrf.mxu1 }
 0x119   :  { %v1081_v17 = vpop.f32.mrf.mxu0 }
 0x11a   :  { %v1015_v18 = vpack.c.bf16 %v785_v12, %v785_v12  ;;  %v737_v19 = vadd.f32 %v1161_v14, %v617_v13  ;;  %v1082_v20 = vadd.f32 %v1081_v17, %v1080_v11  ;;  %v1163_v21 = vpop.f32.mrf.mxu1 }
 0x11b   :  { %v1083_v22 = vpop.f32.mrf.mxu0  ;;  %v1164_v25 = vadd.f32 %v1163_v21, %v1162_v15 }
 0x11c   :  { %892 = vst.msk [vmem:[%s1640_s3 + $0x2c] sm:$0xf] %vm880_vm0, %v1015_v18  ;;  %v786_v23 = vmax.f32 %v737_v19, 0.0  ;;  %v620_v24 = vadd.f32 %v1082_v20, %v1530_v16  ;;  %v1165_v26 = vpop.f32.mrf.mxu1 }
 0x11d   :  { %v1084_v27 = vpop.f32.mrf.mxu0 }
 0x11e   :  { %v1016_v28 = vpack.c.bf16 %v786_v23, %v786_v23  ;;  %v740_v29 = vadd.f32 %v1164_v25, %v620_v24  ;;  %v1085_v30 = vadd.f32 %v1084_v27, %v1083_v22  ;;  %v1166_v31 = vpop.f32.mrf.mxu1 }
 0x11f   :  { %v1086_v32 = vpop.f32.mrf.mxu0  ;;  %v1167_v35 = vadd.f32 %v1166_v31, %v1165_v26 }
 0x120   :  { %893 = vst.msk [vmem:[%s1640_s3 + $0x30] sm:$0xf] %vm880_vm0, %v1016_v28  ;;  %v787_v33 = vmax.f32 %v740_v29, 0.0  ;;  %v625_v34 = vadd.f32 %v1085_v30, %v1530_v16  ;;  %v1168_v36 = vpop.f32.mrf.mxu1 }
 0x121   :  { %v1087_v37 = vpop.f32.mrf.mxu0 }
 0x122   :  { %v1017_v38 = vpack.c.bf16 %v787_v33, %v787_v33  ;;  %v745_v39 = vadd.f32 %v1167_v35, %v625_v34  ;;  %v1088_v40 = vadd.f32 %v1087_v37, %v1086_v32  ;;  %v1169_v41 = vpop.f32.mrf.mxu1 }
 0x123   :  { %v1089_v42 = vpop.f32.mrf.mxu0  ;;  %v1170_v45 = vadd.f32 %v1169_v41, %v1168_v36 }
 0x124   :  { %894 = vst.msk [vmem:[%s1640_s3 + $0x34] sm:$0xf] %vm880_vm0, %v1017_v38  ;;  %v788_v43 = vmax.f32 %v745_v39, 0.0  ;;  %v628_v44 = vadd.f32 %v1088_v40, %v1530_v16  ;;  %v1171_v46 = vpop.f32.mrf.mxu1 }
 0x125   :  { %v1090_v47 = vpop.f32.mrf.mxu0 }
 0x126   :  { %v1018_v48 = vpack.c.bf16 %v788_v43, %v788_v43  ;;  %v748_v49 = vadd.f32 %v1170_v45, %v628_v44  ;;  %v1091_v50 = vadd.f32 %v1090_v47, %v1089_v42  ;;  %v1172_v51 = vpop.f32.mrf.mxu1 }
 0x127   :  { %v1092_v52 = vpop.f32.mrf.mxu0  ;;  %v1173_v55 = vadd.f32 %v1172_v51, %v1171_v46 }
 0x128   :  { %895 = vst.msk [vmem:[%s1640_s3 + $0x38] sm:$0xf] %vm880_vm0, %v1018_v48  ;;  %v789_v53 = vmax.f32 %v748_v49, 0.0  ;;  %v633_v54 = vadd.f32 %v1091_v50, %v1530_v16  ;;  %v1174_v56 = vpop.f32.mrf.mxu1 }
 0x129   :  { %v1093_v57 = vpop.f32.mrf.mxu0 }
 0x12a   :  { %v1019_v58 = vpack.c.bf16 %v789_v53, %v789_v53  ;;  %v753_v59 = vadd.f32 %v1173_v55, %v633_v54  ;;  %v1094_v60 = vadd.f32 %v1093_v57, %v1092_v52  ;;  %v1175_v61 = vpop.f32.mrf.mxu1 }
 0x12b   :  { %v1095_v62 = vpop.f32.mrf.mxu0  ;;  %v1176_v1 = vadd.f32 %v1175_v61, %v1174_v56 }
 0x12c   :  { %896 = vst.msk [vmem:[%s1640_s3 + $0x3c] sm:$0xf] %vm880_vm0, %v1019_v58  ;;  %v790_v63 = vmax.f32 %v753_v59, 0.0  ;;  %v636_v0 = vadd.f32 %v1094_v60, %v1530_v16  ;;  %v1177_v2 = vpop.f32.mrf.mxu1 }
 0x12d   :  { %v1096_v3 = vpop.f32.mrf.mxu0 }
 0x12e   :  { %v1020_v4 = vpack.c.bf16 %v790_v63, %v790_v63  ;;  %v756_v5 = vadd.f32 %v1176_v1, %v636_v0  ;;  %v1097_v6 = vadd.f32 %v1096_v3, %v1095_v62  ;;  %v1178_v7 = vpop.f32.mrf.mxu1 }
 0x12f   :  { %v1098_v8 = vpop.f32.mrf.mxu0  ;;  %v1179_v11 = vadd.f32 %v1178_v7, %v1177_v2 }
 0x130   :  { %897 = vst.msk [vmem:[%s1640_s3 + $0x40] sm:$0xf] %vm880_vm0, %v1020_v4  ;;  %v791_v9 = vmax.f32 %v756_v5, 0.0  ;;  %v641_v10 = vadd.f32 %v1097_v6, %v1530_v16  ;;  %v1180_v12 = vpop.f32.mrf.mxu1 }
 0x131   :  { %v1099_v13 = vpop.f32.mrf.mxu0 }
 0x132   :  { %v1021_v14 = vpack.c.bf16 %v791_v9, %v791_v9  ;;  %v761_v15 = vadd.f32 %v1179_v11, %v641_v10  ;;  %v1100_v17 = vadd.f32 %v1099_v13, %v1098_v8  ;;  %v1181_v18 = vpop.f32.mrf.mxu1 }
 0x133   :  { %v1101_v19 = vpop.f32.mrf.mxu0  ;;  %v1182_v22 = vadd.f32 %v1181_v18, %v1180_v12 }
 0x134   :  { %898 = vst.msk [vmem:[%s1640_s3 + $0x44] sm:$0xf] %vm880_vm0, %v1021_v14  ;;  %v792_v20 = vmax.f32 %v761_v15, 0.0  ;;  %v644_v21 = vadd.f32 %v1100_v17, %v1530_v16  ;;  %v1183_v23 = vpop.f32.mrf.mxu1 }
 0x135   :  { %v1102_v24 = vpop.f32.mrf.mxu0 }
 0x136   :  { %v1022_v25 = vpack.c.bf16 %v792_v20, %v792_v20  ;;  %v764_v26 = vadd.f32 %v1182_v22, %v644_v21  ;;  %v1103_v27 = vadd.f32 %v1102_v24, %v1101_v19  ;;  %v1184_v28 = vpop.f32.mrf.mxu1 }
 0x137   :  { %v1104_v29 = vpop.f32.mrf.mxu0  ;;  %v1185_v32 = vadd.f32 %v1184_v28, %v1183_v23 }
 0x138   :  { %899 = vst.msk [vmem:[%s1640_s3 + $0x48] sm:$0xf] %vm880_vm0, %v1022_v25  ;;  %v793_v30 = vmax.f32 %v764_v26, 0.0  ;;  %v649_v31 = vadd.f32 %v1103_v27, %v1530_v16  ;;  %v1186_v33 = vpop.f32.mrf.mxu1 }
 0x139   :  { %v1105_v34 = vpop.f32.mrf.mxu0 }
 0x13a   :  { %v1023_v35 = vpack.c.bf16 %v793_v30, %v793_v30  ;;  %v769_v36 = vadd.f32 %v1185_v32, %v649_v31  ;;  %v1187_v37 = vpop.f32.mrf.mxu1 }
 0x13c   :  { %900 = vst.msk [vmem:[%s1640_s3 + $0x4c] sm:$0xf] %vm880_vm0, %v1023_v35  ;;  %v794_v38 = vmax.f32 %v769_v36, 0.0 }
 0x13e   :  { %v1024_v39 = vpack.c.bf16 %v794_v38, %v794_v38 }
 0x140   :  { %901 = vst.msk [vmem:[%s1640_s3 + $0x50] sm:$0xf] %vm880_vm0, %v1024_v39 }

// kernel: policy_forward.5
= control target key start
LH: loop header
LB: loop body
LE: loop exit
PB: predicated region body
PF: predicated region fallthrough
CT: control target
= control target key end

     0   :  { %12 = vsyncpa [#allocation3], 0  ;;  %v1483_v0 = vmov 0.0   ;;  %v1485_v1 = vmov 0.0   ;;  %v1487_v2 = vmov 0.0   ;;  %v1489_v3 = vmov 0.0   ;;  %s1780_s0 = inlined_call_operand.vmem [shape: bf16[49,2,576], index: 0, kind: input, shape index: {}]   ;;  %s1781_s1 = inlined_call_operand.vmem [shape: bf16[576,32], index: 1, kind: input, shape index: {}]   ;;  %s1782_s2 = inlined_call_operand.vmem [shape: f32[1,32], index: 2, kind: input, shape index: {}]   ;;  %s1783_s3 = inlined_call_operand.vmem [shape: bf16[49,32,512], index: 3, kind: input, shape index: {}]   ;;  %s1784_s4 = inlined_call_operand.vmem [shape: f32[1,512], index: 4, kind: input, shape index: {}]   ;;  %s1785_s5 = inlined_call_operand.vmem [shape: bf16[512,6], index: 5, kind: input, shape index: {}]   ;;  %s1786_s6 = inlined_call_operand.vmem [shape: f32[1,6], index: 6, kind: input, shape index: {}]   ;;  %s1787_s7 = inlined_call_operand.hbm [shape: f32[2,6], index: 7, kind: output, shape index: {}]  }
   0x1   :  { %s1491_s24 = smov 0  }
   0x2 LB: > { %v1295_v4 = vld [vmem:[%s1781_s1 + $0x78] sm:$0xff]   ;;  %v1299_v8 = vld [vmem:[%s1781_s1 + $0x70] sm:$0xff]   ;;  %v1303_v12 = vld [vmem:[%s1781_s1 + $0x68] sm:$0xff]   ;;  %v125_v32 = vlaneseq  ;;  %s38_s16 = smul.u32 5, %s1436_s24  ;;  %v1438_v37 = vmov 1966171168   ;;  %s1436_s24 = sphi %s1491_s24, %s33_s24   ;;  %v1432_v3 = vphi %v1489_v3, %v1795_v3   ;;  %v1428_v2 = vphi %v1487_v2, %v1794_v2   ;;  %v1424_v1 = vphi %v1485_v1, %v1793_v1   ;;  %v1420_v0 = vphi %v1483_v0, %v1792_v0  }
   0x3   : > { %v1296_v5 = vld [vmem:[%s1781_s1 + $0x38] sm:$0xff]   ;;  %1145 = vmatprep.subr.bf16.mxu0 %v1295_v4  ;;  %v1300_v9 = vld [vmem:[%s1781_s1 + $0x30] sm:$0xff]   ;;  %v1304_v13 = vld [vmem:[%s1781_s1 + $0x28] sm:$0xff]   ;;  %v123_v38 = vunpack.c.l.s4 %v1438_v37  ;;  %s1144_s25 = sshll.u32 %s1436_s24, 6  ;;  %v1439_v40 = vmov 0.0   ;;  %vm1440_vm0 = vmmov 0  }
   0x4   : > { %v1297_v6 = vld [vmem:[%s1781_s1 + $0xf8] sm:$0xff]   ;;  %1146 = vmatpush3.bf16.msra.mxu0 %v1296_v5  ;;  %v1301_v10 = vld [vmem:[%s1781_s1 + $0xf0] sm:$0xff]   ;;  %v1305_v14 = vld [vmem:[%s1781_s1 + $0xe8] sm:$0xff]   ;;  %v1602_v36 = vshrl.u32 %v125_v32, 7  ;;  %s39_s23 = scalar_lea.vmem %s1780_s0, %s38_s16  ;;  %s1614_s30 = scalar_lea.vmem %s1783_s3, %s1144_s25  ;;  %vm380_vm1 = vcmask 523264   ;;  %v1441_v62 = vmov 0  }
   0x5   : > { %v1298_v7 = vld [vmem:[%s1781_s1 + $0xb8] sm:$0xff]   ;;  %1167 = vmatprep.subr.bf16.mxu1 %v1297_v6  ;;  %1147 = vmatprep.subr.bf16.mxu0 %v1299_v8  ;;  %v1302_v11 = vld [vmem:[%s1781_s1 + $0xb0] sm:$0xff]   ;;  %v1306_v15 = vld [vmem:[%s1781_s1 + $0xa8] sm:$0xff]   ;;  %v124_v41 = vunpack.c.0.s8 %v123_v38  ;;  %vm557_vm2 = vcmask 261120   ;;  %s33_s24 = sadd.s32 1, %s1436_s24  }
   0x6   : > { %1168 = vmatpush3.bf16.msra.mxu1 %v1298_v7  ;;  %v1307_v16 = vld [vmem:[%s1781_s1 + $0x60] sm:$0xff]   ;;  %v1311_v20 = vld [vmem:[%s1781_s1 + $0x58] sm:$0xff]   ;;  %v1315_v24 = vld [vmem:[%s1781_s1 + $0x50] sm:$0xff]   ;;  %p30_p0 = scmp.ge.s32.totalorder %s33_s24, 49  }
   0x7   : > { %1169 = vmatprep.subr.bf16.mxu1 %v1301_v10  ;;  %v1308_v17 = vld [vmem:[%s1781_s1 + $0x20] sm:$0xff]   ;;  %v1312_v21 = vld [vmem:[%s1781_s1 + $0x18] sm:$0xff]   ;;  %v1316_v25 = vld [vmem:[%s1781_s1 + $0x10] sm:$0xff]   ;;  %v127_v43 = vsub.s32 %v124_v41, %v1602_v36  ;;  %s1442_s3 = smov (%p30_p0), [#allocation2]   ;;  %vm1024_vm3 = vcmask (%p30_p0), 41984  }
   0x8   : > { %1148 = vmatpush3.bf16.msra.mxu0 %v1300_v9  ;;  %v1309_v18 = vld [vmem:[%s1781_s1 + $0xe0] sm:$0xff]   ;;  %v1313_v22 = vld [vmem:[%s1781_s1 + $0xd8] sm:$0xff]   ;;  %v1317_v26 = vld [vmem:[%s1781_s1 + $0xd0] sm:$0xff]   ;;  %s1032_s27 = sshll.u32 (%p30_p0), %s1442_s3, 4  ;;  %s1033_s27 = int_to_ptr.vmem [resolvable:$true] %s1032_s27 }
   0x9   : > { %1149 = vmatprep.subr.bf16.mxu0 %v1303_v12  ;;  %v1310_v19 = vld [vmem:[%s1781_s1 + $0xa0] sm:$0xff]   ;;  %v1314_v23 = vld [vmem:[%s1781_s1 + $0x98] sm:$0xff]   ;;  %v1318_v27 = vld [vmem:[%s1781_s1 + $0x90] sm:$0xff]   ;;  %s1376_s28 = scalar_lea.vmem (%p30_p0), %s1033_s27, 32  ;;  %p1381_p2 = scmp.lt.s32.totalorder (%p30_p0), %s1033_s27, %s1033_s27 }
   0xa   : > { %1170 = vmatpush3.bf16.msra.mxu1 %v1302_v11  ;;  %v1319_v28 = vld [vmem:[%s1781_s1 + $0x48] sm:$0xff]   ;;  %v1323_v33 = vld [vmem:[%s1781_s1 + $0x40] sm:$0xff]   ;;  %v1328_v48 = vld [vmem:[%s1781_s1 + $0x118] sm:$0xff]   ;;  %p1377_p1 = scmp.ne.s32.totalorder (%p30_p0), %s1033_s27, %s1376_s28  ;;  %p1382_p3 = scmp.lt.s32.totalorder (%p30_p0), %s1376_s28, %s1376_s28 }
   0xb   : > { %1171 = vmatprep.subr.bf16.mxu1 %v1305_v14  ;;  %v1320_v29 = vld [vmem:[%s1781_s1 + $0x8] sm:$0xff]   ;;  %v1324_v34 = vld [vmem:[%s1781_s1] sm:$0xff]   ;;  %v1329_v51 = vld [vmem:[%s1781_s1 + $0x110] sm:$0xff]  }
   0xc   : > { %1150 = vmatpush3.bf16.msra.mxu0 %v1304_v13  ;;  %v1321_v30 = vld [vmem:[%s1781_s1 + $0xc8] sm:$0xff]   ;;  %v1325_v35 = vld [vmem:[%s1781_s1 + $0xc0] sm:$0xff]   ;;  %v1347_v41 = vld [vmem:[%s1785_s5 + $0xb8] sm:$0xff] (%p30_p0)   ;;  %p1383_p4 = por (%p30_p0), %p1382_p3, %p1381_p2 }
   0xd   : > { %1151 = vmatprep.subr.bf16.mxu0 %v1307_v16  ;;  %v1322_v31 = vld [vmem:[%s1781_s1 + $0x88] sm:$0xff]   ;;  %v1327_v39 = vld [vmem:[%s1781_s1 + $0x80] sm:$0xff]  }
   0xe   : > { %1172 = vmatpush3.bf16.msra.mxu1 %v1306_v15  ;;  %v40_v42 = vld [vmem:[%s39_s23] sm:$0x1f]  ;;  %v1330_v53 = vld [vmem:[%s1781_s1 + $0x108] sm:$0xff]   ;;  %p1384_p5 = pnand (%p30_p0), %p1383_p4, %p1377_p1 }
   0xf   : > { %1173 = vmatprep.subr.bf16.mxu1 %v1309_v18  ;;  %v128_v44 = vrot.slane %v40_v42, %v127_v43  ;;  %v121_v52 = vcombine.high %v40_v42, %v40_v42  ;;  %v1331_v55 = vld [vmem:[%s1781_s1 + $0x100] sm:$0xff]   ;;  %v1340_v61 = vld [vmem:[%s1614_s30 + $0x2c] ss:$16 sps:$4 sm:$0xff]   ;;  %v1351_v42 = vld [vmem:[%s1785_s5 + $0xb0] sm:$0xff] (%p30_p0)  }
  0x10   : > { %1152 = vmatpush3.bf16.msra.mxu0 %v1308_v17  ;;  %v1332_v57 = vld [vmem:[%s1614_s30 + $0x20] ss:$16 sps:$4 sm:$0xff]   ;;  %v1334_v58 = vld [vmem:[%s1614_s30 + $0x24] ss:$16 sps:$4 sm:$0xff]  }
  0x11   : > { %1153 = vmatprep.subr.bf16.mxu0 %v1311_v20  ;;  %v136_v45 = vcombine.high %v128_v44, %v128_v44  ;;  %v143_v46 = vrot.slane %v128_v44, %v127_v43  ;;  %v135_v54 = vrot.slane %v121_v52, %v127_v43  ;;  %v1337_v59 = vld [vmem:[%s1614_s30 + $0x4] ss:$16 sps:$4 sm:$0xff]   ;;  %v1335_v60 = vld [vmem:[%s1614_s30] ss:$16 sps:$4 sm:$0xff]   ;;  %v1353_v44 = vld [vmem:[%s1785_s5 + $0xe8] sm:$0xff] (%p30_p0)  }
  0x12   : > { %1174 = vmatpush3.bf16.msra.mxu1 %v1310_v19  ;;  %v1061_v11 = vld [vmem:[%s1782_s2] ss:$0 sm:$0xff]  ;;  %v1361_v52 = vld [vmem:[%s1785_s5 + $0xd8] sm:$0xff] (%p30_p0)  }
  0x13   : > { %1175 = vmatprep.subr.bf16.mxu1 %v1313_v22  ;;  %v157_v47 = vrot.slane %v136_v45, %v127_v43  ;;  %v158_v49 = vcombine.high %v143_v46, %v143_v46  ;;  %v150_v56 = vrot.slane %v135_v54, %v127_v43  ;;  %v1352_v43 = vld [vmem:[%s1785_s5 + $0x68] sm:$0xff] (%p30_p0)   ;;  %v1363_v54 = vld [vmem:[%s1785_s5 + $0x98] sm:$0xff] (%p30_p0)  }
  0x14   : > { %1154 = vmatpush3.bf16.msra.mxu0 %v1312_v21  ;;  %v1338_v21 = vld [vmem:[%s1614_s30 + $0x28] ss:$16 sps:$4 sm:$0xff]  }
  0x15   : > { %1155 = vmatprep.subr.bf16.mxu0 %v1315_v24  ;;  %416 = vmatprep.mubr.bf16.mxu0 %v157_v47  ;;  %v159_v50 = vcombine.high %v157_v47, %v157_v47  ;;  %v1354_v45 = vld [vmem:[%s1785_s5 + $0x28] sm:$0xff] (%p30_p0)   ;;  %v1356_v47 = vld [vmem:[%s1785_s5 + $0x60] sm:$0xff] (%p30_p0)  }
  0x16   : > { %1176 = vmatpush3.bf16.msra.mxu1 %v1314_v23  ;;  %v1343_v23 = vld [vmem:[%s1614_s30 + $0xc] ss:$16 sps:$4 sm:$0xff]  }
  0x17   : > { %1177 = vmatprep.subr.bf16.mxu1 %v1317_v26  ;;  %456 = vmatprep.mubr.bf16.mxu1 %v159_v50  ;;  %v1359_v50 = vld [vmem:[%s1785_s5 + $0xa0] sm:$0xff] (%p30_p0)  }
  0x18   : > { %1156 = vmatpush3.bf16.msra.mxu0 %v1316_v25  ;;  %v1341_v25 = vld [vmem:[%s1614_s30 + $0x8] ss:$16 sps:$4 sm:$0xff]  }
  0x19   : > { %1157 = vmatprep.subr.bf16.mxu0 %v1319_v28 }
  0x1a   : > { %1178 = vmatpush3.bf16.msra.mxu1 %v1318_v27 }
  0x1b   : > { %1179 = vmatprep.subr.bf16.mxu1 %v1321_v30 }
  0x1c   : > { %1158 = vmatpush3.bf16.msra.mxu0 %v1320_v29 }
  0x1d   : > { %1159 = vmatprep.subr.bf16.mxu0 %v1323_v33 }
  0x1e   : > { %1180 = vmatpush3.bf16.msra.mxu1 %v1322_v31 }
  0x1f   : > { %1181 = vmatprep.subr.bf16.mxu1 %v1325_v35 }
  0x20   : > { %1160 = vmatpush3.bf16.msra.mxu0 %v1324_v34 }
  0x21   : > { %1238 = vmatprep.subr.bf16.mxu0 %v1439_v40 }
  0x22   : > { %1182 = vmatpush3.bf16.msra.mxu1 %v1327_v39  ;;  %v1345_v39 = vld [vmem:[%s1785_s5 + $0xf8] sm:$0xff] (%p30_p0)  }
  0x23   : > { %417 = vmatmul.mubr.bf16.vlgmr.msra.gmra.mxu0 %v143_v46  ;;  %573 = vmatprep.subr.bf16.mxu1 %v1334_v58  ;;  %v1355_v46 = vld [vmem:[%s1785_s5 + $0xa8] sm:$0xff] (%p30_p0)   ;;  %v1367_v58 = vld [vmem:[%s1785_s5 + $0x90] sm:$0xff] (%p30_p0)  }
  0x24   : > { %1239 = vmatpush3.bf16.msra.mxu0 %v1328_v48  ;;  %1246 = vmatprep.mubr.msk.bf16.mxu0 %vm1440_vm0, %v1439_v40  ;;  %v1357_v48 = vld [vmem:[%s1785_s5 + $0xe0] sm:$0xff] (%p30_p0)  }
  0x25   : > { %457 = vmatmul.mubr.bf16.vlgmr.msra.gmra.mxu1 %v158_v49  ;;  %1240 = vmatprep.subr.bf16.mxu0 %v1439_v40  ;;  %v1358_v49 = vld [vmem:[%s1785_s5 + $0x20] sm:$0xff] (%p30_p0)  }
  0x26   : > { %574 = vmatpush1.bf16.msra.mxu1 %v1332_v57  ;;  %593 = vmatprep.mubr.bf16.mxu1 %v1441_v62  ;;  %v1366_v57 = vld [vmem:[%s1785_s5 + $0x10] sm:$0xff] (%p30_p0)  }
  0x27   : > { %575 = vmatprep.subr.bf16.mxu1 %v1337_v59  ;;  %v1368_v59 = vld [vmem:[%s1785_s5 + $0x48] sm:$0xff] (%p30_p0)  }
  0x28   : > { %1241 = vmatpush3.bf16.msra.mxu0 %v1329_v51  ;;  %v1360_v51 = vld [vmem:[%s1785_s5 + $0x58] sm:$0xff] (%p30_p0)  }
  0x29   : > { %1242 = vmatprep.subr.bf16.mxu0 %v1439_v40 }
  0x2a   : > { %576 = vmatpush1.bf16.msra.mxu1 %v1335_v60  ;;  %v1369_v60 = vld [vmem:[%s1785_s5 + $0xc8] sm:$0xff] (%p30_p0)  }
  0x2b   : > { %614 = vmatprep.subr.bf16.mxu1 %v1340_v61  ;;  %v1370_v61 = vld [vmem:[%s1785_s5 + $0x8] sm:$0xff] (%p30_p0)  }
  0x2c   : > { %1243 = vmatpush3.bf16.msra.mxu0 %v1330_v53  ;;  %v1362_v53 = vld [vmem:[%s1785_s5 + $0x18] sm:$0xff] (%p30_p0)  }
  0x2d   : > { %1244 = vmatprep.subr.bf16.mxu0 %v1439_v40  ;;  %v1346_v40 = vld [vmem:[%s1785_s5 + $0x38] sm:$0xff] (%p30_p0)  }
  0x30   : > { %1245 = vmatpush3.bf16.msra.mxu0 %v1331_v55  ;;  %v1364_v55 = vld [vmem:[%s1785_s5 + $0x50] sm:$0xff] (%p30_p0)  }
  0x33   : > { %1247 = vmatmul.mubr.msk.bf16.vlgmr.msra.gmra.mxu0 %vm380_vm1, %v150_v56  ;;  %v1365_v56 = vld [vmem:[%s1785_s5 + $0xd0] sm:$0xff] (%p30_p0)  }
  0xe3   : > { %v1161_v63 = vpop.f32.mrf.mxu0 }
  0xe5   : > { %v1162_v4 = vpop.f32.mrf.mxu0  ;;  %v1183_v5 = vpop.f32.mrf.mxu1 }
  0xe6   : > { %v1163_v10 = vadd.f32 %v1162_v4, %v1161_v63  ;;  %v1371_v63 = vld [vmem:[%s1785_s5 + $0x88] sm:$0xff] (%p30_p0)   ;;  %v663_v4 = vsub.s32 (%p30_p0), 3, %v1602_v36 }
  0xe7   : > { %v1164_v6 = vpop.f32.mrf.mxu0  ;;  %v1184_v7 = vpop.f32.mrf.mxu1 }
  0xe8   : > { %v419_v13 = vadd.f32 %v1163_v10, %v1061_v11  ;;  %v1185_v14 = vadd.f32 %v1184_v7, %v1183_v5  ;;  %v1372_v5 = vld [vmem:[%s1785_s5 + $0x40] sm:$0xff] (%p30_p0)   ;;  %v651_v6 = vsub.s32 (%p30_p0), 0, %v1602_v36 }
  0xe9   : > { %v1165_v8 = vpop.f32.mrf.mxu0  ;;  %v1186_v9 = vpop.f32.mrf.mxu1  ;;  %v1373_v7 = vld [vmem:[%s1785_s5 + $0xc0] sm:$0xff] (%p30_p0)  }
  0xea   : > { %v459_v15 = vadd.f32 %v1185_v14, %v419_v13  ;;  %v659_v8 = vsub.s32 (%p30_p0), 2, %v1602_v36  ;;  %v1374_v9 = vld [vmem:[%s1785_s5] sm:$0xff] (%p30_p0)  }
  0xeb   : > { %v1187_v12 = vpop.f32.mrf.mxu1  ;;  %v1375_v10 = vld [vmem:[%s1785_s5 + $0x80] sm:$0xff] (%p30_p0)  }
  0xec   :  { %v647_v11 = vld [vmem:[%s1784_s4] sm:$0xf] (%p30_p0) }
  0xed   :  { %v664_v13 = vrot.slane (%p30_p0), %v647_v11, %v663_v4  ;;  %v652_v14 = vrot.slane (%p30_p0), %v647_v11, %v651_v6 }
  0xf3   : > { %v498_v16 = vpop.f32.mrf.mxu0 }
  0xf4   : > { %v499_v17 = vadd.f32 %v498_v16, %v459_v15 }
  0xf5   : > { %v1248_v18 = vpop.f32.mrf.mxu0 }
  0xf6   : > { %v504_v19 = vmax.f32 %v499_v17, 0.0 }
  0xf7   : > { %v501_v20 = vpop.f32.mrf.mxu0 }
  0xf8   : > { %v505_v22 = vpack.c.bf16 %v504_v19, %v504_v19 }
  0xf9   : > { %v1249_v24 = vpop.f32.mrf.mxu0 }
  0xfa   : > { %1109 = vmatmul.mubr.msk.bf16.vlgmr.msra.gmra.mxu1 %vm557_vm2, %v505_v22 }
  0xfb   : > { %615 = vmatpush1.bf16.msra.mxu1 %v1338_v21  ;;  %634 = vmatprep.mubr.bf16.mxu1 %v1441_v62  ;;  %v655_v62 = vsub.s32 (%p30_p0), 1, %v1602_v36  ;;  %v660_v36 = vrot.slane (%p30_p0), %v647_v11, %v659_v8 }
  0xfc   : > { %616 = vmatprep.subr.bf16.mxu1 %v1343_v23 }
  0xfd   :  { %v656_v12 = vrot.slane (%p30_p0), %v647_v11, %v655_v62 }
  0xff   : > { %617 = vmatpush1.bf16.msra.mxu1 %v1341_v25 }
 0x100   :  { %1216 = vmatprep.subr.bf16.mxu1 (%p30_p0), %v1345_v39 }
 0x102   : > { %1110 = vmatmul.mubr.msk.bf16.vlgmr.msra.gmra.mxu1 %vm557_vm2, %v505_v22 }
 0x103   :  { %1217 = vmatpush3.bf16.msra.mxu1 (%p30_p0), %v1347_v41 }
 0x1ba   : > { %v595_v26 = vpop.f32.mrf.mxu1 }
 0x1bb   : > { %v1641_v3 = vadd.f32 %v1432_v3, %v595_v26  }
 0x1bc   : > { %v597_v28 = vpop.f32.mrf.mxu1 }
 0x1bd   : > { %v1788_v27 = vmov %v1641_v3  ;;  %v1644_v2 = vadd.f32 %v1428_v2, %v597_v28  }
 0x1be   : > { %v599_v30 = vpop.f32.mrf.mxu1  ;;  %v1795_v3 = vmov %v1788_v27  ;;  %v669_v17 = vadd.f32 (%p30_p0), %v652_v14, %v1788_v27  ;;  %v1111_v27 = vld [vmem:[%s1786_s6] ss:$0 sm:$0xff] (%p30_p0) }
 0x1bf   : > { %v1789_v29 = vmov %v1644_v2  ;;  %v1344_v3 = vld [vmem:[%s1785_s5 + $0x78] sm:$0xff] (%p30_p0)  }
 0x1c0   : > { %v600_v31 = vpop.f32.mrf.mxu1  ;;  %v1794_v2 = vmov %v1789_v29  ;;  %1194 = vmatprep.subr.bf16.mxu0 (%p30_p0), %v1344_v3  ;;  %v670_v15 = vadd.f32 (%p30_p0), %v656_v12, %v1789_v29  ;;  %v673_v21 = vmax.f32 (%p30_p0), %v669_v17, 0.0 }
 0x1c1   :  { %1195 = vmatpush3.bf16.msra.mxu0 (%p30_p0), %v1346_v40  ;;  %v1350_v2 = vld [vmem:[%s1785_s5 + $0x30] sm:$0xff] (%p30_p0)  }
 0x1c2   : > { %v636_v32 = vpop.f32.mrf.mxu1  ;;  %v674_v19 = vmax.f32 (%p30_p0), %v670_v15, 0.0  ;;  %v677_v25 = vpack.c.bf16 (%p30_p0), %v673_v21, %v673_v21 }
 0x1c3   : > { %v1647_v1 = vadd.f32 %v1424_v1, %v636_v32  }
 0x1c4   : > { %v638_v34 = vpop.f32.mrf.mxu1  ;;  %32 = sbr.rel (!%p30_p0) target bundleno = 2 (0x2), region = 57  ;;  %v678_v23 = vpack.c.bf16 (%p30_p0), %v674_v19, %v674_v19 }
 0x1c5   : > { %v1790_v33 = vmov %v1647_v1  ;;  %v1650_v0 = vadd.f32 %v1420_v0, %v638_v34  }
 0x1c6   : > { %v640_v37 = vpop.f32.mrf.mxu1  ;;  %v1793_v1 = vmov %v1790_v33  ;;  %v671_v18 = vadd.f32 (%p30_p0), %v660_v36, %v1790_v33  ;;  %976 = vmatprep.mubr.bf16.mxu0 (%p30_p0), %v678_v23 }
 0x1c7   : > { %v1791_v35 = vmov %v1650_v0  ;;  %v1349_v1 = vld [vmem:[%s1785_s5 + $0xf0] sm:$0xff] (%p30_p0)  }
 0x1c8   : > { %v641_v38 = vpop.f32.mrf.mxu1  ;;  %v1792_v0 = vmov %v1791_v35  ;;  %1218 = vmatprep.subr.bf16.mxu1 (%p30_p0), %v1349_v1  ;;  %v672_v16 = vadd.f32 (%p30_p0), %v664_v13, %v1791_v35  ;;  %v675_v22 = vmax.f32 (%p30_p0), %v671_v18, 0.0 }
 0x1c9   :  { %v1348_v0 = vld [vmem:[%s1785_s5 + $0x70] sm:$0xff]   ;;  %1219 = vmatpush3.bf16.msra.mxu1 %v1351_v42 }
 0x1ca   :  { %1196 = vmatprep.subr.bf16.mxu0 %v1348_v0  ;;  %1220 = vmatprep.subr.bf16.mxu1 %v1353_v44  ;;  %v676_v20 = vmax.f32 %v672_v16, 0.0  ;;  %v679_v26 = vpack.c.bf16 %v675_v22, %v675_v22 }
 0x1cb   :  { %1197 = vmatpush3.bf16.msra.mxu0 %v1350_v2 }
 0x1cc   :  { %1198 = vmatprep.subr.bf16.mxu0 %v1352_v43  ;;  %v680_v24 = vpack.c.bf16 %v676_v20, %v676_v20 }
 0x1cd   :  { %1221 = vmatpush3.bf16.msra.mxu1 %v1355_v46 }
 0x1ce   :  { %1222 = vmatprep.subr.bf16.mxu1 %v1357_v48  ;;  %1016 = vmatprep.mubr.bf16.mxu1 %v680_v24 }
 0x1cf   :  { %1199 = vmatpush3.bf16.msra.mxu0 %v1354_v45 }
 0x1d0   :  { %1200 = vmatprep.subr.bf16.mxu0 %v1356_v47 }
 0x1d1   :  { %1223 = vmatpush3.bf16.msra.mxu1 %v1359_v50 }
 0x1d2   :  { %1224 = vmatprep.subr.bf16.mxu1 %v1361_v52 }
 0x1d3   :  { %1201 = vmatpush3.bf16.msra.mxu0 %v1358_v49 }
 0x1d4   :  { %1202 = vmatprep.subr.bf16.mxu0 %v1360_v51 }
 0x1d5   :  { %1225 = vmatpush3.bf16.msra.mxu1 %v1363_v54 }
 0x1d6   :  { %1226 = vmatprep.subr.bf16.mxu1 %v1365_v56 }
 0x1d7   :  { %1203 = vmatpush3.bf16.msra.mxu0 %v1362_v53 }
 0x1d8   :  { %1204 = vmatprep.subr.bf16.mxu0 %v1364_v55 }
 0x1d9   :  { %1227 = vmatpush3.bf16.msra.mxu1 %v1367_v58 }
 0x1da   :  { %1228 = vmatprep.subr.bf16.mxu1 %v1369_v60 }
 0x1db   :  { %1205 = vmatpush3.bf16.msra.mxu0 %v1366_v57 }
 0x1dc   :  { %1206 = vmatprep.subr.bf16.mxu0 %v1368_v59 }
 0x1dd   :  { %1229 = vmatpush3.bf16.msra.mxu1 %v1371_v63 }
 0x1de   :  { %1230 = vmatprep.subr.bf16.mxu1 %v1373_v7 }
 0x1df   :  { %1207 = vmatpush3.bf16.msra.mxu0 %v1370_v61 }
 0x1e0   :  { %1208 = vmatprep.subr.bf16.mxu0 %v1372_v5 }
 0x1e1   :  { %1231 = vmatpush3.bf16.msra.mxu1 %v1375_v10 }
 0x1e3   :  { %1209 = vmatpush3.bf16.msra.mxu0 %v1374_v9 }
 0x1e4   :  { %1017 = vmatmul.mubr.bf16.vlgmr.msra.gmra.mxu1 %v679_v26 }
 0x1e6   :  { %977 = vmatmul.mubr.bf16.vlgmr.msra.gmra.mxu0 %v677_v25 }
 0x2a4   :  { %v1232_v29 = vpop.f32.mrf.mxu1 }
 0x2a6   :  { %v1210_v28 = vpop.f32.mrf.mxu0  ;;  %v1233_v31 = vpop.f32.mrf.mxu1 }
 0x2a7   :  { %v1234_v37 = vadd.f32 %v1233_v31, %v1232_v29 }
 0x2a8   :  { %v1211_v30 = vpop.f32.mrf.mxu0  ;;  %v1235_v34 = vpop.f32.mrf.mxu1 }
 0x2a9   :  { %v1212_v32 = vadd.f32 %v1211_v30, %v1210_v28 }
 0x2aa   :  { %v1213_v33 = vpop.f32.mrf.mxu0  ;;  %v1236_v3 = vpop.f32.mrf.mxu1 }
 0x2ab   :  { %v979_v35 = vadd.f32 %v1212_v32, %v1111_v27 }
 0x2ac   :  { %v1214_v38 = vpop.f32.mrf.mxu0 }
 0x2ad   :  { %v1019_v39 = vadd.f32 %v1234_v37, %v979_v35 }
 0x2af   :  { %1025 = vst.msk [vmem:[#allocation2] sm:$0x3] %vm1024_vm3, %v1019_v39 }
 0x2b0   :  { %1387 = shalt.err (!%p1384_p5)
}
 0x2b1   :  { %1035 = dma.vmem_to_hbm [thread:$0]  %s1033_s27, 32, %s1787_s7, [#allocation3]  }
 0x2b2   :  { %1416 = dma.done.wait [#allocation3], 32  }
 0x2b3   :  { %1417 = vsyncadd [#allocation3], 4294967264 }
 0x2b4   :  { %1039 = vsyncpa [#allocation3], 1 }

</bundles_post_ra>
